<compile_context>
chip_gen: v6e
topology: v6e:2x2x1
jax: 0.10.0
libtpu: 0.0.40
codegen_flags: <defaults>
</compile_context>

<pallas_src>
import jax
import jax.numpy as jnp
from jax.experimental import pallas as pl
from jax.experimental.pallas import tpu as pltpu

HIDDEN = 8               # hidden width of the stand-in pointwise "UNet"
DC = True                # module default dc=True
CORNER_ORIGIN = False    # module default; checkerboard FFT-shift fusion implements this case

SMEM_SPEC = pl.BlockSpec(memory_space=pltpu.MemorySpace.SMEM)


# ---------------------------------------------------------------------------
# Per-generation VMEM sizing (v5e/v6e: 128 MiB, v7x: 64 MiB per TC).
# ---------------------------------------------------------------------------
def _tpu_vmem_capacity():
    try:
        info = pltpu.get_tpu_info()
        cap = int(getattr(info, "vmem_capacity_bytes", 0))
        if cap > 0:
            return cap
    except Exception:
        pass
    return 64 << 20          # conservative fallback (v7x per-TC VMEM)


_VMEM_CAP = _tpu_vmem_capacity()
_VMEM_LIMIT = int(_VMEM_CAP * 3 // 4)                 # explicit scoped-VMEM limit
_VMEM_BUDGET = max(_VMEM_CAP // 32, 1 << 20)          # ~per-buffer target (double buffering)


def _cparams(*sem):
    return pltpu.CompilerParams(dimension_semantics=sem,
                                vmem_limit_bytes=_VMEM_LIMIT)


# ---------------------------------------------------------------------------
# Block-size helpers (respect the (8, 128) tiling rule: a block dim must be a
# multiple of 8 / 128 or equal to the full array dim).
# ---------------------------------------------------------------------------
def _chunk(n, bytes_per_unit, budget=None):
    """Divisor of n that is n itself or a multiple of 8, sized to the budget.
    If nothing fits the budget the smallest legal block is used; the raised
    vmem_limit_bytes keeps that case compiling."""
    budget = _VMEM_BUDGET if budget is None else budget
    cands = sorted({d for d in range(8, n + 1, 8) if n % d == 0} | {n})
    fitting = [d for d in cands if d * bytes_per_unit <= budget]
    return max(fitting) if fitting else min(cands)


def _pchunk(P, row_elems, budget=None):
    """Multiple-of-128 divisor of P (<= P//2 when possible so the parallel grid
    axis has >= 2 steps for v7x megacore); falls back to the smallest legal
    P-tile, then to the full P."""
    budget = _VMEM_BUDGET if budget is None else budget
    cands = [d for d in range(128, P // 2 + 1, 128) if P % d == 0]
    fitting = [d for d in cands if d * row_elems * 4 <= budget]
    if fitting:
        return max(fitting)
    return min(cands) if cands else P


# ---------------------------------------------------------------------------
# Pallas kernels
# ---------------------------------------------------------------------------
def coil_expand_kernel(xr_ref, xi_ref, smr_ref, smi_ref, d_ref, yr_ref, yi_ref):
    # y[b, c, :] = D * (sMaps[c, :] * x[b, :])   (complex multiply, broadcast form)
    # D = (-1)^(ix+iy) folds the ifftshift preceding the centered FFT.
    xr = xr_ref[...][:, None, :]          # (B, 1, pc)
    xi = xi_ref[...][:, None, :]
    sr = smr_ref[...][None, :, :]         # (1, cc, pc)
    si = smi_ref[...][None, :, :]
    d = d_ref[...][None, :, :]            # (1, 1, pc)
    yr_ref[...] = d * (sr * xr - si * xi)
    yi_ref[...] = d * (sr * xi + si * xr)


def coil_combine_kernel(yr_ref, yi_ref, smr_ref, smi_ref, sc_ref,
                        xr_ref, xi_ref, nrm_ref):
    # x[b, :] = scale * sum_c conj(sMaps[c, :]) * y[b, c, :]
    # scale = s*D folds the fftshift following the centered inverse FFT.
    # nrm: per-P-tile partial of ||x||^2, written once at the last coil step.
    c = pl.program_id(1)

    @pl.when(c == 0)
    def _():
        xr_ref[...] = jnp.zeros_like(xr_ref)
        xi_ref[...] = jnp.zeros_like(xi_ref)

    sr = smr_ref[...][None, :, :]         # (1, cc, pc)
    si = smi_ref[...][None, :, :]
    yr = yr_ref[...]                      # (B, cc, pc)
    yi = yi_ref[...]
    xr_ref[...] += jnp.sum(sr * yr + si * yi, axis=1)    # (B, pc)
    xi_ref[...] += jnp.sum(sr * yi - si * yr, axis=1)

    # NOTE: the coil axis accumulates into the resident output block; it must
    # stay 'arbitrary' in dimension_semantics (the P tiling is the parallel axis).
    @pl.when(c == pl.num_programs(1) - 1)
    def _():
        sc = sc_ref[...]                  # (1, pc)
        xr = xr_ref[...] * sc
        xi = xi_ref[...] * sc
        xr_ref[...] = xr
        xi_ref[...] = xi
        nrm_ref[...] = jnp.broadcast_to(
            jnp.sum(xr * xr + xi * xi, keepdims=True), nrm_ref.shape)


def residual_mod_kernel(fr_ref, fi_ref, br_ref, bi_ref, pa_ref, pmd_ref,
                        rr_ref, ri_ref):
    # out = D * M * (Ax - b) = s*mask*Fx - mask*D*b  (feeds the adjoint ifftn)
    pa = pa_ref[...]                      # s * mask
    pmd = pmd_ref[...]                    # mask * D
    rr_ref[...] = pa * fr_ref[...] - pmd * br_ref[...]
    ri_ref[...] = pa * fi_ref[...] - pmd * bi_ref[...]


def ag_reduce_kernel(fr_ref, fi_ref, rr_ref, ri_ref, m_ref, dot_ref, nrm_ref):
    # Per-step partial reductions for the analytic line search; A*g itself is
    # never masked/materialized:
    #   dot = <D M r, M Fg>  (host multiplies by the global sign s -> <r, A g>)
    #   nrm = ||M Fg||^2     (= ||A g||^2)
    m = m_ref[...]
    fr = m * fr_ref[...]
    fi = m * fi_ref[...]
    dot = jnp.sum(rr_ref[...] * fr + ri_ref[...] * fi, keepdims=True)
    nrm = jnp.sum(fr * fr + fi * fi, keepdims=True)
    dot_ref[...] = jnp.broadcast_to(dot, dot_ref.shape)
    nrm_ref[...] = jnp.broadcast_to(nrm, nrm_ref.shape)


def dc_mod_kernel(alpha_ref, fr_ref, fi_ref, agr_ref, agi_ref, br_ref, bi_ref,
                  pb_ref, pk_ref, zr_ref, zi_ref):
    # Data consistency, pre-modulated for the following inverse FFT, with the
    # k-space gradient-step axpy fused in (linearity: F(D S (x - a g)) = F - a*AG):
    #   k   = fr - a*agr
    #   out = D * where(mask, b, s*D*k) = (mask*D)*b + s*(1-mask)*k
    a = alpha_ref[0, 0]
    pb = pb_ref[...]                      # mask * D
    pk = pk_ref[...]                      # s * (1 - mask)
    zr_ref[...] = pb * br_ref[...] + pk * (fr_ref[...] - a * agr_ref[...])
    zi_ref[...] = pb * bi_ref[...] + pk * (fi_ref[...] - a * agi_ref[...])


def axpy_kernel(alpha_ref, xr_ref, xi_ref, gr_ref, gi_ref, or_ref, oi_ref):
    a = alpha_ref[0, 0]
    or_ref[...] = xr_ref[...] - a * gr_ref[...]
    oi_ref[...] = xi_ref[...] - a * gi_ref[...]


def pixel_mlp_kernel(xr_ref, xi_ref, w1_ref, b1_ref, w2_ref, b2_ref, yr_ref, yi_ref):
    # complex_to_channels -> per-pixel 2 -> HIDDEN -> 2 MLP (ReLU) -> channels_to_complex
    xr, xi = xr_ref[...], xi_ref[...]
    yr = jnp.full_like(xr, b2_ref[0, 0])
    yi = jnp.full_like(xi, b2_ref[0, 1])
    for h in range(HIDDEN):
        act = jnp.maximum(xr * w1_ref[0, h] + xi * w1_ref[1, h] + b1_ref[0, h], 0.0)
        yr = yr + act * w2_ref[h, 0]
        yi = yi + act * w2_ref[h, 1]
    yr_ref[...] = yr
    yi_ref[...] = yi


# ---------------------------------------------------------------------------
# Wrappers (pallas_call plumbing)
# ---------------------------------------------------------------------------
def coil_expand(xr, xi, smr, smi, d_flat):
    B, P = xr.shape
    nC = smr.shape[0]
    cc = _chunk(nC, B * P * 4)
    pc = _pchunk(P, B * cc)
    img_spec = pl.BlockSpec((B, pc), lambda c, p: (0, p))
    sm_spec = pl.BlockSpec((cc, pc), lambda c, p: (c, p))
    pat_spec = pl.BlockSpec((1, pc), lambda c, p: (0, p))
    out_spec = pl.BlockSpec((B, cc, pc), lambda c, p: (0, c, p))
    out_shape = (jax.ShapeDtypeStruct((B, nC, P), jnp.float32),) * 2
    return pl.pallas_call(
        coil_expand_kernel,
        out_shape=out_shape,
        grid=(nC // cc, P // pc),
        in_specs=[img_spec, img_spec, sm_spec, sm_spec, pat_spec],
        out_specs=(out_spec, out_spec),
        compiler_params=_cparams("parallel", "parallel"),
    )(xr, xi, smr, smi, d_flat)


def coil_combine(yr, yi, smr, smi, scale_flat):
    """Returns ((x_r, x_i), ||x||^2); the norm is free side-work of the combine."""
    B, nC, P = yr.shape
    cc = _chunk(nC, B * P * 4)
    pc = _pchunk(P, B * cc)
    gp = P // pc
    y_spec = pl.BlockSpec((B, cc, pc), lambda p, c: (0, c, p))
    sm_spec = pl.BlockSpec((cc, pc), lambda p, c: (c, p))
    sc_spec = pl.BlockSpec((1, pc), lambda p, c: (0, p))
    out_spec = pl.BlockSpec((B, pc), lambda p, c: (0, p))
    nrm_spec = pl.BlockSpec((1, 128), lambda p, c: (0, p))
    out_shape = (jax.ShapeDtypeStruct((B, P), jnp.float32),
                 jax.ShapeDtypeStruct((B, P), jnp.float32),
                 jax.ShapeDtypeStruct((1, gp * 128), jnp.float32))
    xr, xi, nrm = pl.pallas_call(
        coil_combine_kernel,
        out_shape=out_shape,
        grid=(gp, nC // cc),
        in_specs=[y_spec, y_spec, sm_spec, sm_spec, sc_spec],
        out_specs=(out_spec, out_spec, nrm_spec),
        compiler_params=_cparams("parallel", "arbitrary"),
    )(yr, yi, smr, smi, scale_flat)
    return (xr, xi), jnp.sum(nrm[0, ::128])


def residual_mod(fr, fi, br, bi, pat_a, pat_md):
    R, P = fr.shape
    rc = _chunk(R, P * 4)
    row_spec = pl.BlockSpec((rc, P), lambda i: (i, 0))
    pat_spec = pl.BlockSpec((1, P), lambda i: (0, 0))
    out_shape = (jax.ShapeDtypeStruct((R, P), jnp.float32),) * 2
    return pl.pallas_call(
        residual_mod_kernel,
        out_shape=out_shape,
        grid=(R // rc,),
        in_specs=[row_spec] * 4 + [pat_spec] * 2,
        out_specs=(row_spec, row_spec),
        compiler_params=_cparams("parallel"),
    )(fr, fi, br, bi, pat_a, pat_md)


def ag_reduce(fr, fi, rr, ri, mask_flat):
    R, P = fr.shape
    rc = _chunk(R, P * 4)
    G = R // rc
    row_spec = pl.BlockSpec((rc, P), lambda i: (i, 0))
    pat_spec = pl.BlockSpec((1, P), lambda i: (0, 0))
    part_spec = pl.BlockSpec((1, 128), lambda i: (0, i))
    dot, nrm = pl.pallas_call(
        ag_reduce_kernel,
        out_shape=(jax.ShapeDtypeStruct((1, G * 128), jnp.float32),) * 2,
        grid=(G,),
        in_specs=[row_spec] * 4 + [pat_spec],
        out_specs=(part_spec, part_spec),
        compiler_params=_cparams("parallel"),
    )(fr, fi, rr, ri, mask_flat)
    return jnp.sum(dot[0, ::128]), jnp.sum(nrm[0, ::128])


def dc_mod(alpha, fr, fi, agr, agi, br, bi, pat_b, pat_k):
    R, P = fr.shape
    rc = _chunk(R, P * 4)
    row_spec = pl.BlockSpec((rc, P), lambda i: (i, 0))
    pat_spec = pl.BlockSpec((1, P), lambda i: (0, 0))
    a = jnp.reshape(alpha, (1, 1)).astype(jnp.float32)
    out_shape = (jax.ShapeDtypeStruct((R, P), jnp.float32),) * 2
    return pl.pallas_call(
        dc_mod_kernel,
        out_shape=out_shape,
        grid=(R // rc,),
        in_specs=[SMEM_SPEC] + [row_spec] * 6 + [pat_spec] * 2,
        out_specs=(row_spec, row_spec),
        compiler_params=_cparams("parallel"),
    )(a, fr, fi, agr, agi, br, bi, pat_b, pat_k)


def axpy(alpha, xr, xi, gr, gi):
    B, P = xr.shape
    rc = _chunk(B, P * 4)
    row_spec = pl.BlockSpec((rc, P), lambda i: (i, 0))
    a = jnp.reshape(alpha, (1, 1)).astype(jnp.float32)
    out_shape = (jax.ShapeDtypeStruct((B, P), jnp.float32),) * 2
    return pl.pallas_call(
        axpy_kernel,
        out_shape=out_shape,
        grid=(B // rc,),
        in_specs=[SMEM_SPEC, row_spec, row_spec, row_spec, row_spec],
        out_specs=(row_spec, row_spec),
        compiler_params=_cparams("parallel"),
    )(a, xr, xi, gr, gi)


def pixel_mlp(xr, xi, w1, b1, w2, b2):
    B, P = xr.shape
    rc = _chunk(B, P * 4)
    row_spec = pl.BlockSpec((rc, P), lambda i: (i, 0))
    out_shape = (jax.ShapeDtypeStruct((B, P), jnp.float32),) * 2
    return pl.pallas_call(
        pixel_mlp_kernel,
        out_shape=out_shape,
        grid=(B // rc,),
        in_specs=[row_spec, row_spec, SMEM_SPEC, SMEM_SPEC, SMEM_SPEC, SMEM_SPEC],
        out_specs=(row_spec, row_spec),
        compiler_params=_cparams("parallel"),
    )(xr, xi, w1, b1, w2, b2)


# ---------------------------------------------------------------------------
# JAX glue: bare FFTs (shifts are folded into the Pallas kernels), patterns,
# closed-form analytic line search, operator composition.
# ---------------------------------------------------------------------------
def fftn_raw(zr, zi, Nx, Ny, inverse=False):
    # TODO(synk): no Pallas FFT primitive on TPU; uses jnp.fft (XLA).  The
    # fftshift/ifftshift pairs of the centered transform are a (-1)^(x+y)
    # checkerboard (and a global sign) fused into the neighbouring Pallas
    # kernels, so only the bare transform runs here.
    # TODO(synk): the complex pack/unpack here is an extra HBM pass unless XLA
    # fuses it with the FFT's own copy; an interleaved re/im layout emitted
    # from the Pallas side would remove it.
    B, nC, P = zr.shape
    z = (zr + 1j * zi).astype(jnp.complex64).reshape(B, nC, Nx, Ny)
    fn = jnp.fft.ifftn if inverse else jnp.fft.fftn
    z = fn(z, axes=(-2, -1), norm='ortho').reshape(B, nC, P)
    return jnp.real(z).astype(jnp.float32), jnp.imag(z).astype(jnp.float32)


def _patterns(mask_f, Nx, Ny):
    # mask_f: (Ny,) float32 in {0, 1}
    P = Nx * Ny
    ix = jnp.arange(Nx, dtype=jnp.int32)[:, None]
    iy = jnp.arange(Ny, dtype=jnp.int32)[None, :]
    d = 1.0 - 2.0 * ((ix + iy) % 2).astype(jnp.float32)      # checkerboard D
    s = float((-1) ** ((Nx // 2) + (Ny // 2)))                # global shift sign (static)
    m = jnp.broadcast_to(mask_f[None, :], (Nx, Ny))
    d_flat = d.reshape(1, P)
    m_flat = m.reshape(1, P)
    return dict(
        d=d_flat,                       # D                 (pre-FFT modulation)
        scale=s * d_flat,               # s*D               (post-iFFT modulation, coil combine)
        pat_a=s * m_flat,               # s*mask            (post-FFT sign + k-space mask)
        pat_md=m_flat * d_flat,         # mask*D
        pat_keep=s * (1.0 - m_flat),    # s*(1-mask)        (DC keep coefficient)
        mask=m_flat,
        s=s,
    )


def unrolled_block_forward(xr, xi, mask_f, br, bi, smr, smi, w1, b1, w2, b2):
    B, Nx, Ny = xr.shape
    nC = smr.shape[0]
    P = Nx * Ny
    assert not CORNER_ORIGIN, "only the module-default cornerOrigin=False path is implemented"
    assert Nx % 2 == 0 and Ny % 2 == 0, "checkerboard FFT-shift fusion requires even Nx, Ny"

    pats = _patterns(mask_f, Nx, Ny)
    x_r = xr.reshape(B, P)
    x_i = xi.reshape(B, P)
    sm_r = smr.reshape(nC, P)
    sm_i = smi.reshape(nC, P)
    bk_r = br.reshape(B * nC, P)
    bk_i = bi.reshape(B * nC, P)

    def fwd_kspace_raw(ur, ui):
        # fftn(D * S u)  -- raw FFT of the checkerboard-modulated coil images
        yr, yi = coil_expand(ur, ui, sm_r, sm_i, pats['d'])
        return fftn_raw(yr, yi, Nx, Ny, inverse=False)

    # -- gradient direction -------------------------------------------------
    fr, fi = fwd_kspace_raw(x_r, x_i)
    fr2 = fr.reshape(B * nC, P)
    fi2 = fi.reshape(B * nC, P)
    # masked / modulated residual D*M*(Ax - b) feeding the adjoint FFT
    # (the reference's applyM in the adjoint is folded into pat_md: exact).
    rr, ri = residual_mod(fr2, fi2, bk_r, bk_i, pats['pat_a'], pats['pat_md'])
    # adjoint: g = S^H F^H M (Ax - b); ||g||^2 is a free by-product of the combine.
    gr_k, gi_k = fftn_raw(rr.reshape(B, nC, P), ri.reshape(B, nC, P), Nx, Ny, inverse=True)
    (g_r, g_i), gx_norm = coil_combine(gr_k, gi_k, sm_r, sm_i, pats['scale'])

    # A g: only its two scalar reductions are needed; the raw k-space of g is
    # kept alive and reused by the DC step (so the forward operator runs only
    # twice per block instead of three times).
    agr, agi = fwd_kspace_raw(g_r, g_i)
    agr2 = agr.reshape(B * nC, P)
    agi2 = agi.reshape(B * nC, P)
    dot_raw, ag_norm = ag_reduce(agr2, agi2, rr, ri, pats['mask'])
    r_dot_ag = pats['s'] * dot_raw

    # -- closed-form Armijo backtracking (obj_x cancels analytically) --------
    # condition at a = 0.5*rho^k:  obj(x - a g) < obj(x) - a*c*||g||^2
    #   <=>  a < 2*(<r,Ag> - c*||g||^2) / ||Ag||^2
    rho = jnp.float32(0.9)
    c = jnp.float32(0.9)
    tiny = jnp.float32(1e-30)
    thr = 2.0 * (r_dot_ag - c * gx_norm) / jnp.maximum(ag_norm, tiny)
    valid = jnp.logical_and(thr > 0.0, ag_norm > 0.0)
    k_real = jnp.log(jnp.maximum(2.0 * thr, tiny)) / jnp.log(rho)
    k = jnp.clip(jnp.floor(k_real) + 1.0, 0.0, 249.0)          # smallest k with 0.5*rho^k < thr
    k = jnp.where(valid, k, jnp.float32(249.0))                # never satisfied -> alpha_249
    alpha = jnp.float32(0.5) * jnp.power(rho, k)

    # -- data consistency (prox), module default dc=True ---------------------
    if DC:
        # F(D*S*(x - alpha*g)) = fr - alpha*agr (linearity): no third forward pass,
        # and the image-domain gradient update is dead here, so it is skipped.
        zr, zi = dc_mod(alpha, fr2, fi2, agr2, agi2, bk_r, bk_i,
                        pats['pat_md'], pats['pat_keep'])
        wr, wi = fftn_raw(zr.reshape(B, nC, P), zi.reshape(B, nC, P), Nx, Ny, inverse=True)
        (x_r, x_i), _ = coil_combine(wr, wi, sm_r, sm_i, pats['scale'])
    else:
        x_r, x_i = axpy(alpha, x_r, x_i, g_r, g_i)

    # TODO(synk): WaveletTransform (applyW) source not provided; treated as identity.
    # complex_to_channels -> nn -> channels_to_complex (nn stand-in: per-pixel MLP)
    x_r, x_i = pixel_mlp(x_r, x_i, w1, b1, w2, b2)

    out_r = x_r.reshape(B, Nx, Ny)
    out_i = x_i.reshape(B, Nx, Ny)
    return (out_r, out_i), mask_f, (br, bi)


# ---------------------------------------------------------------------------
# Pure-jnp reference (explicit fftshift/ifftshift, original backtracking loop)
# ---------------------------------------------------------------------------
def ref_applyF(y, op='notransp'):
    axes = (-2, -1)
    if op == 'transp':
        return jnp.fft.fftshift(
            jnp.fft.ifftn(jnp.fft.ifftshift(y, axes=axes), axes=axes, norm='ortho'),
            axes=axes)
    return jnp.fft.fftshift(
        jnp.fft.fftn(jnp.fft.ifftshift(y, axes=axes), axes=axes, norm='ortho'),
        axes=axes)


def ref_applyA(z, smaps, mask_bool, op='notransp'):
    if op == 'transp':
        y = jnp.where(mask_bool[None, None, None, :], z, jnp.zeros((), z.dtype))
        y = ref_applyF(y, 'transp')
        return jnp.sum(jnp.conj(smaps)[None] * y, axis=1)
    y = smaps[None] * z[:, None]
    y = ref_applyF(y)
    return jnp.where(mask_bool[None, None, None, :], y, jnp.zeros((), y.dtype))


def reference_forward(x, mask_bool, b, smaps, w1, b1, w2, b2):
    """Eager reference mirroring the PyTorch module (W = identity, nn = MLP)."""
    def obj(img):
        d = ref_applyA(img, smaps, mask_bool) - b
        return 0.5 * float(jnp.sum(jnp.abs(d) ** 2))

    gx = ref_applyA(ref_applyA(x, smaps, mask_bool) - b, smaps, mask_bool, 'transp')
    gx_norm = float(jnp.sum(jnp.abs(gx) ** 2))
    obj_x = obj(x)
    alpha, rho, c = 0.5, 0.9, 0.9
    x_new = x
    it = 0
    while it < 250:
        it += 1
        x_new = x - alpha * gx
        if obj(x_new) < obj_x - alpha * c * gx_norm:
            break
        alpha *= rho
    out = x_new
    if DC:
        y = ref_applyF(smaps[None] * out[:, None])
        y = jnp.where(mask_bool[None, None, None, :], b, y)
        out = jnp.sum(jnp.conj(smaps)[None] * ref_applyF(y, 'transp'), axis=1)
    feat = jnp.stack([jnp.real(out), jnp.imag(out)], axis=-1)
    hid = jnp.maximum(feat @ w1 + b1[0], 0.0)
    oc = hid @ w2 + b2[0]
    return (oc[..., 0] + 1j * oc[..., 1]).astype(jnp.complex64)


# ---------------------------------------------------------------------------
# Driver
# ---------------------------------------------------------------------------
def _run_case(fwd, key, B, nC, Nx, Ny):
    keys = jax.random.split(key, 8)

    smr = jax.random.normal(keys[0], (nC, Nx, Ny), dtype=jnp.float32)
    smi = jax.random.normal(keys[1], (nC, Nx, Ny), dtype=jnp.float32)
    nrm = jnp.sqrt(jnp.sum(smr * smr + smi * smi, axis=0, keepdims=True)) + 1e-6
    smr, smi = smr / nrm, smi / nrm
    smaps = (smr + 1j * smi).astype(jnp.complex64)

    idx = jnp.arange(Ny)
    mask_bool = (idx % 2 == 0) | ((idx >= Ny // 2 - 2) & (idx < Ny // 2 + 2))
    mask_f = mask_bool.astype(jnp.float32)

    xt = (jax.random.normal(keys[2], (B, Nx, Ny)) +
          1j * jax.random.normal(keys[3], (B, Nx, Ny))).astype(jnp.complex64)

    # measured k-space b = M F S x_true ; zero-filled init x0 = A^H b
    b = ref_applyA(xt, smaps, mask_bool, 'notransp')
    x0 = ref_applyA(b, smaps, mask_bool, 'transp')

    w1 = 0.3 * jax.random.normal(keys[4], (2, HIDDEN), dtype=jnp.float32)
    b1 = 0.1 * jax.random.normal(keys[5], (1, HIDDEN), dtype=jnp.float32)
    w2 = 0.3 * jax.random.normal(keys[6], (HIDDEN, 2), dtype=jnp.float32)
    b2 = 0.1 * jax.random.normal(keys[7], (1, 2), dtype=jnp.float32)

    (out_r, out_i), _, _ = fwd(jnp.real(x0), jnp.imag(x0), mask_f,
                               jnp.real(b), jnp.imag(b),
                               smr, smi, w1, b1, w2, b2)
    jax.block_until_ready((out_r, out_i))

    assert out_r.shape == (B, Nx, Ny) and out_i.shape == (B, Nx, Ny)
    assert bool(jnp.all(jnp.isfinite(out_r)) & jnp.all(jnp.isfinite(out_i)))

    ref = reference_forward(x0, mask_bool, b, smaps, w1, b1, w2, b2)
    out = out_r + 1j * out_i
    err = float(jnp.max(jnp.abs(out - ref)))
    scale = float(jnp.max(jnp.abs(ref))) + 1e-6
    assert err <= 5e-3 * scale + 1e-3, f"mismatch vs reference: err={err}, scale={scale}"


if __name__ == "__main__":
    fwd = jax.jit(unrolled_block_forward)
    key = jax.random.PRNGKey(0)
    # two shapes: exercises both global shift signs (+1 / -1), B>1 and B==1
    for (B, nC, Nx, Ny) in [(2, 4, 16, 16), (1, 4, 16, 18)]:
        key, sub = jax.random.split(key)
        _run_case(fwd, sub, B, nC, Nx, Ny)
    print("KERNEL_OK")
</pallas_src>

<mosaic_0001>
module attributes {stable_mosaic.version = 11 : i64} {
  func.func @coil_expand_kernel(%arg0: i32, %arg1: i32, %arg2: memref<2x128xf32, #tpu.memory_space<vmem>>, %arg3: memref<2x128xf32, #tpu.memory_space<vmem>>, %arg4: memref<4x128xf32, #tpu.memory_space<vmem>>, %arg5: memref<4x128xf32, #tpu.memory_space<vmem>>, %arg6: memref<1x128xf32, #tpu.memory_space<vmem>>, %arg7: memref<2x4x128xf32, #tpu.memory_space<vmem>>, %arg8: memref<2x4x128xf32, #tpu.memory_space<vmem>>) attributes {dimension_semantics = [#tpu.dimension_semantics<parallel>, #tpu.dimension_semantics<parallel>], iteration_bounds = array<i64: 1, 2>, scalar_prefetch = 0 : i64, scratch_operands = 0 : i64, tpu.core_type = #tpu.core_type<tc>, window_params = [{transform_indices = @transform_0, window_bounds = array<i64: 2, 128>}, {transform_indices = @transform_1, window_bounds = array<i64: 2, 128>}, {transform_indices = @transform_2, window_bounds = array<i64: 4, 128>}, {transform_indices = @transform_3, window_bounds = array<i64: 4, 128>}, {transform_indices = @transform_4, window_bounds = array<i64: 1, 128>}, {transform_indices = @transform_5, window_bounds = array<i64: 2, 4, 128>}, {transform_indices = @transform_6, window_bounds = array<i64: 2, 4, 128>}]} {
    %c0 = arith.constant 0 : index
    %c0_0 = arith.constant 0 : index
    %0 = vector.load %arg2[%c0, %c0_0] : memref<2x128xf32, #tpu.memory_space<vmem>>, vector<2x128xf32>
    %1 = vector.shape_cast %0 : vector<2x128xf32> to vector<2x1x128xf32>
    %c0_1 = arith.constant 0 : index
    %c0_2 = arith.constant 0 : index
    %2 = vector.load %arg3[%c0_1, %c0_2] : memref<2x128xf32, #tpu.memory_space<vmem>>, vector<2x128xf32>
    %3 = vector.shape_cast %2 : vector<2x128xf32> to vector<2x1x128xf32>
    %c0_3 = arith.constant 0 : index
    %c0_4 = arith.constant 0 : index
    %4 = vector.load %arg4[%c0_3, %c0_4] : memref<4x128xf32, #tpu.memory_space<vmem>>, vector<4x128xf32>
    %5 = vector.shape_cast %4 : vector<4x128xf32> to vector<1x4x128xf32>
    %c0_5 = arith.constant 0 : index
    %c0_6 = arith.constant 0 : index
    %6 = vector.load %arg5[%c0_5, %c0_6] : memref<4x128xf32, #tpu.memory_space<vmem>>, vector<4x128xf32>
    %7 = vector.shape_cast %6 : vector<4x128xf32> to vector<1x4x128xf32>
    %c0_7 = arith.constant 0 : index
    %c0_8 = arith.constant 0 : index
    %8 = vector.load %arg6[%c0_7, %c0_8] : memref<1x128xf32, #tpu.memory_space<vmem>>, vector<1x128xf32>
    %9 = vector.shape_cast %8 : vector<1x128xf32> to vector<1x1x128xf32>
    %10 = vector.broadcast %5 : vector<1x4x128xf32> to vector<2x4x128xf32>
    %11 = vector.broadcast %1 : vector<2x1x128xf32> to vector<2x4x128xf32>
    %12 = arith.mulf %10, %11 : vector<2x4x128xf32>
    %13 = vector.broadcast %7 : vector<1x4x128xf32> to vector<2x4x128xf32>
    %14 = vector.broadcast %3 : vector<2x1x128xf32> to vector<2x4x128xf32>
    %15 = arith.mulf %13, %14 : vector<2x4x128xf32>
    %16 = arith.subf %12, %15 : vector<2x4x128xf32>
    %17 = vector.broadcast %9 : vector<1x1x128xf32> to vector<2x4x128xf32>
    %18 = arith.mulf %17, %16 : vector<2x4x128xf32>
    %c0_9 = arith.constant 0 : index
    %c0_10 = arith.constant 0 : index
    %c0_11 = arith.constant 0 : index
    %19 = vector.load %arg7[%c0_9, %c0_10, %c0_11] : memref<2x4x128xf32, #tpu.memory_space<vmem>>, vector<2x4x128xf32>
    tpu.vector_store %arg7[%c0_9, %c0_10, %c0_11], %18 {strides = array<i32>} : memref<2x4x128xf32, #tpu.memory_space<vmem>>, vector<2x4x128xf32>,
    %20 = vector.broadcast %5 : vector<1x4x128xf32> to vector<2x4x128xf32>
    %21 = vector.broadcast %3 : vector<2x1x128xf32> to vector<2x4x128xf32>
    %22 = arith.mulf %20, %21 : vector<2x4x128xf32>
    %23 = vector.broadcast %7 : vector<1x4x128xf32> to vector<2x4x128xf32>
    %24 = vector.broadcast %1 : vector<2x1x128xf32> to vector<2x4x128xf32>
    %25 = arith.mulf %23, %24 : vector<2x4x128xf32>
    %26 = arith.addf %22, %25 : vector<2x4x128xf32>
    %27 = vector.broadcast %9 : vector<1x1x128xf32> to vector<2x4x128xf32>
    %28 = arith.mulf %27, %26 : vector<2x4x128xf32>
    %c0_12 = arith.constant 0 : index
    %c0_13 = arith.constant 0 : index
    %c0_14 = arith.constant 0 : index
    %29 = vector.load %arg8[%c0_12, %c0_13, %c0_14] : memref<2x4x128xf32, #tpu.memory_space<vmem>>, vector<2x4x128xf32>
    tpu.vector_store %arg8[%c0_12, %c0_13, %c0_14], %28 {strides = array<i32>} : memref<2x4x128xf32, #tpu.memory_space<vmem>>, vector<2x4x128xf32>,
    return
  }
  func.func @transform_0(%arg0: i32, %arg1: i32) -> (i32, i32) {
    %c0_i32 = arith.constant 0 : i32
    %c0_i32_0 = arith.constant 0 : i32
    return %c0_i32, %arg1 : i32, i32
  }
  func.func @transform_1(%arg0: i32, %arg1: i32) -> (i32, i32) {
    %c0_i32 = arith.constant 0 : i32
    %c0_i32_0 = arith.constant 0 : i32
    return %c0_i32, %arg1 : i32, i32
  }
  func.func @transform_2(%arg0: i32, %arg1: i32) -> (i32, i32) {
    %c0_i32 = arith.constant 0 : i32
    return %arg0, %arg1 : i32, i32
  }
  func.func @transform_3(%arg0: i32, %arg1: i32) -> (i32, i32) {
    %c0_i32 = arith.constant 0 : i32
    return %arg0, %arg1 : i32, i32
  }
  func.func @transform_4(%arg0: i32, %arg1: i32) -> (i32, i32) {
    %c0_i32 = arith.constant 0 : i32
    %c0_i32_0 = arith.constant 0 : i32
    return %c0_i32, %arg1 : i32, i32
  }
  func.func @transform_5(%arg0: i32, %arg1: i32) -> (i32, i32, i32) {
    %c0_i32 = arith.constant 0 : i32
    %c0_i32_0 = arith.constant 0 : i32
    return %c0_i32, %arg0, %arg1 : i32, i32, i32
  }
  func.func @transform_6(%arg0: i32, %arg1: i32) -> (i32, i32, i32) {
    %c0_i32 = arith.constant 0 : i32
    %c0_i32_0 = arith.constant 0 : i32
    return %c0_i32, %arg0, %arg1 : i32, i32, i32
  }
}

module attributes {stable_mosaic.version = 11 : i64} {
  func.func @residual_mod_kernel(%arg0: i32, %arg1: memref<8x256xf32, #tpu.memory_space<vmem>>, %arg2: memref<8x256xf32, #tpu.memory_space<vmem>>, %arg3: memref<8x256xf32, #tpu.memory_space<vmem>>, %arg4: memref<8x256xf32, #tpu.memory_space<vmem>>, %arg5: memref<1x256xf32, #tpu.memory_space<vmem>>, %arg6: memref<1x256xf32, #tpu.memory_space<vmem>>, %arg7: memref<8x256xf32, #tpu.memory_space<vmem>>, %arg8: memref<8x256xf32, #tpu.memory_space<vmem>>) attributes {dimension_semantics = [#tpu.dimension_semantics<parallel>], iteration_bounds = array<i64: 1>, scalar_prefetch = 0 : i64, scratch_operands = 0 : i64, tpu.core_type = #tpu.core_type<tc>, window_params = [{transform_indices = @transform_0, window_bounds = array<i64: 8, 256>}, {transform_indices = @transform_1, window_bounds = array<i64: 8, 256>}, {transform_indices = @transform_2, window_bounds = array<i64: 8, 256>}, {transform_indices = @transform_3, window_bounds = array<i64: 8, 256>}, {pipeline_mode = #tpu.pipeline_mode<synchronous>, transform_indices = @transform_4, window_bounds = array<i64: 1, 256>}, {pipeline_mode = #tpu.pipeline_mode<synchronous>, transform_indices = @transform_5, window_bounds = array<i64: 1, 256>}, {transform_indices = @transform_6, window_bounds = array<i64: 8, 256>}, {transform_indices = @transform_7, window_bounds = array<i64: 8, 256>}]} {
    %c0 = arith.constant 0 : index
    %c0_0 = arith.constant 0 : index
    %0 = vector.load %arg5[%c0, %c0_0] : memref<1x256xf32, #tpu.memory_space<vmem>>, vector<1x256xf32>
    %c0_1 = arith.constant 0 : index
    %c0_2 = arith.constant 0 : index
    %1 = vector.load %arg6[%c0_1, %c0_2] : memref<1x256xf32, #tpu.memory_space<vmem>>, vector<1x256xf32>
    %c0_3 = arith.constant 0 : index
    %c0_4 = arith.constant 0 : index
    %2 = vector.load %arg1[%c0_3, %c0_4] : memref<8x256xf32, #tpu.memory_space<vmem>>, vector<8x256xf32>
    %3 = vector.broadcast %0 : vector<1x256xf32> to vector<8x256xf32>
    %4 = arith.mulf %3, %2 : vector<8x256xf32>
    %c0_5 = arith.constant 0 : index
    %c0_6 = arith.constant 0 : index
    %5 = vector.load %arg3[%c0_5, %c0_6] : memref<8x256xf32, #tpu.memory_space<vmem>>, vector<8x256xf32>
    %6 = vector.broadcast %1 : vector<1x256xf32> to vector<8x256xf32>
    %7 = arith.mulf %6, %5 : vector<8x256xf32>
    %8 = arith.subf %4, %7 : vector<8x256xf32>
    %c0_7 = arith.constant 0 : index
    %c0_8 = arith.constant 0 : index
    %9 = vector.load %arg7[%c0_7, %c0_8] : memref<8x256xf32, #tpu.memory_space<vmem>>, vector<8x256xf32>
    tpu.vector_store %arg7[%c0_7, %c0_8], %8 {strides = array<i32>} : memref<8x256xf32, #tpu.memory_space<vmem>>, vector<8x256xf32>,
    %c0_9 = arith.constant 0 : index
    %c0_10 = arith.constant 0 : index
    %10 = vector.load %arg2[%c0_9, %c0_10] : memref<8x256xf32, #tpu.memory_space<vmem>>, vector<8x256xf32>
    %11 = vector.broadcast %0 : vector<1x256xf32> to vector<8x256xf32>
    %12 = arith.mulf %11, %10 : vector<8x256xf32>
    %c0_11 = arith.constant 0 : index
    %c0_12 = arith.constant 0 : index
    %13 = vector.load %arg4[%c0_11, %c0_12] : memref<8x256xf32, #tpu.memory_space<vmem>>, vector<8x256xf32>
    %14 = vector.broadcast %1 : vector<1x256xf32> to vector<8x256xf32>
    %15 = arith.mulf %14, %13 : vector<8x256xf32>
    %16 = arith.subf %12, %15 : vector<8x256xf32>
    %c0_13 = arith.constant 0 : index
    %c0_14 = arith.constant 0 : index
    %17 = vector.load %arg8[%c0_13, %c0_14] : memref<8x256xf32, #tpu.memory_space<vmem>>, vector<8x256xf32>
    tpu.vector_store %arg8[%c0_13, %c0_14], %16 {strides = array<i32>} : memref<8x256xf32, #tpu.memory_space<vmem>>, vector<8x256xf32>,
    return
  }
  func.func @transform_0(%arg0: i32) -> (i32, i32) {
    %c0_i32 = arith.constant 0 : i32
    %c0_i32_0 = arith.constant 0 : i32
    return %arg0, %c0_i32 : i32, i32
  }
  func.func @transform_1(%arg0: i32) -> (i32, i32) {
    %c0_i32 = arith.constant 0 : i32
    %c0_i32_0 = arith.constant 0 : i32
    return %arg0, %c0_i32 : i32, i32
  }
  func.func @transform_2(%arg0: i32) -> (i32, i32) {
    %c0_i32 = arith.constant 0 : i32
    %c0_i32_0 = arith.constant 0 : i32
    return %arg0, %c0_i32 : i32, i32
  }
  func.func @transform_3(%arg0: i32) -> (i32, i32) {
    %c0_i32 = arith.constant 0 : i32
    %c0_i32_0 = arith.constant 0 : i32
    return %arg0, %c0_i32 : i32, i32
  }
  func.func @transform_4(%arg0: i32) -> (i32, i32) {
    %c0_i32 = arith.constant 0 : i32
    %c0_i32_0 = arith.constant 0 : i32
    %c0_i32_1 = arith.constant 0 : i32
    return %c0_i32, %c0_i32_0 : i32, i32
  }
  func.func @transform_5(%arg0: i32) -> (i32, i32) {
    %c0_i32 = arith.constant 0 : i32
    %c0_i32_0 = arith.constant 0 : i32
    %c0_i32_1 = arith.constant 0 : i32
    return %c0_i32, %c0_i32_0 : i32, i32
  }
  func.func @transform_6(%arg0: i32) -> (i32, i32) {
    %c0_i32 = arith.constant 0 : i32
    %c0_i32_0 = arith.constant 0 : i32
    return %arg0, %c0_i32 : i32, i32
  }
  func.func @transform_7(%arg0: i32) -> (i32, i32) {
    %c0_i32 = arith.constant 0 : i32
    %c0_i32_0 = arith.constant 0 : i32
    return %arg0, %c0_i32 : i32, i32
  }
}

module attributes {stable_mosaic.version = 11 : i64} {
  func.func @ag_reduce_kernel(%arg0: i32, %arg1: memref<8x256xf32, #tpu.memory_space<vmem>>, %arg2: memref<8x256xf32, #tpu.memory_space<vmem>>, %arg3: memref<8x256xf32, #tpu.memory_space<vmem>>, %arg4: memref<8x256xf32, #tpu.memory_space<vmem>>, %arg5: memref<1x256xf32, #tpu.memory_space<vmem>>, %arg6: memref<1x128xf32, #tpu.memory_space<vmem>>, %arg7: memref<1x128xf32, #tpu.memory_space<vmem>>) attributes {dimension_semantics = [#tpu.dimension_semantics<parallel>], iteration_bounds = array<i64: 1>, scalar_prefetch = 0 : i64, scratch_operands = 0 : i64, tpu.core_type = #tpu.core_type<tc>, window_params = [{transform_indices = @transform_0, window_bounds = array<i64: 8, 256>}, {transform_indices = @transform_1, window_bounds = array<i64: 8, 256>}, {transform_indices = @transform_2, window_bounds = array<i64: 8, 256>}, {transform_indices = @transform_3, window_bounds = array<i64: 8, 256>}, {pipeline_mode = #tpu.pipeline_mode<synchronous>, transform_indices = @transform_4, window_bounds = array<i64: 1, 256>}, {transform_indices = @transform_5, window_bounds = array<i64: 1, 128>}, {transform_indices = @transform_6, window_bounds = array<i64: 1, 128>}]} {
    %c0 = arith.constant 0 : index
    %c0_0 = arith.constant 0 : index
    %0 = vector.load %arg5[%c0, %c0_0] : memref<1x256xf32, #tpu.memory_space<vmem>>, vector<1x256xf32>
    %c0_1 = arith.constant 0 : index
    %c0_2 = arith.constant 0 : index
    %1 = vector.load %arg1[%c0_1, %c0_2] : memref<8x256xf32, #tpu.memory_space<vmem>>, vector<8x256xf32>
    %2 = vector.broadcast %0 : vector<1x256xf32> to vector<8x256xf32>
    %3 = arith.mulf %2, %1 : vector<8x256xf32>
    %c0_3 = arith.constant 0 : index
    %c0_4 = arith.constant 0 : index
    %4 = vector.load %arg2[%c0_3, %c0_4] : memref<8x256xf32, #tpu.memory_space<vmem>>, vector<8x256xf32>
    %5 = vector.broadcast %0 : vector<1x256xf32> to vector<8x256xf32>
    %6 = arith.mulf %5, %4 : vector<8x256xf32>
    %c0_5 = arith.constant 0 : index
    %c0_6 = arith.constant 0 : index
    %7 = vector.load %arg3[%c0_5, %c0_6] : memref<8x256xf32, #tpu.memory_space<vmem>>, vector<8x256xf32>
    %8 = arith.mulf %7, %3 : vector<8x256xf32>
    %c0_7 = arith.constant 0 : index
    %c0_8 = arith.constant 0 : index
    %9 = vector.load %arg4[%c0_7, %c0_8] : memref<8x256xf32, #tpu.memory_space<vmem>>, vector<8x256xf32>
    %10 = arith.mulf %9, %6 : vector<8x256xf32>
    %11 = arith.addf %8, %10 : vector<8x256xf32>
    %12 = vector.shape_cast %11 : vector<8x256xf32> to vector<1x8x256xf32>
    %cst = arith.constant dense<0.000000e+00> : vector<1xf32>
    %13 = vector.multi_reduction <add>, %12, %cst [1, 2] : vector<1x8x256xf32> to vector<1xf32>
    %14 = vector.shape_cast %13 : vector<1xf32> to vector<1x1x1xf32>
    %15 = vector.extract %14[0, 0, 0] : f32 from vector<1x1x1xf32>
    %16 = vector.broadcast %15 : f32 to vector<1x1xf32>
    %17 = arith.mulf %3, %3 : vector<8x256xf32>
    %18 = arith.mulf %6, %6 : vector<8x256xf32>
    %19 = arith.addf %17, %18 : vector<8x256xf32>
    %20 = vector.shape_cast %19 : vector<8x256xf32> to vector<1x8x256xf32>
    %cst_9 = arith.constant dense<0.000000e+00> : vector<1xf32>
    %21 = vector.multi_reduction <add>, %20, %cst_9 [1, 2] : vector<1x8x256xf32> to vector<1xf32>
    %22 = vector.shape_cast %21 : vector<1xf32> to vector<1x1x1xf32>
    %23 = vector.extract %22[0, 0, 0] : f32 from vector<1x1x1xf32>
    %24 = vector.broadcast %23 : f32 to vector<1x1xf32>
    %25 = vector.shape_cast %16 : vector<1x1xf32> to vector<1x1xf32>
    %26 = vector.broadcast %25 : vector<1x1xf32> to vector<1x128xf32>
    %c0_10 = arith.constant 0 : index
    %c0_11 = arith.constant 0 : index
    %27 = vector.load %arg6[%c0_10, %c0_11] : memref<1x128xf32, #tpu.memory_space<vmem>>, vector<1x128xf32>
    tpu.vector_store %arg6[%c0_10, %c0_11], %26 {strides = array<i32>} : memref<1x128xf32, #tpu.memory_space<vmem>>, vector<1x128xf32>,
    %28 = vector.shape_cast %24 : vector<1x1xf32> to vector<1x1xf32>
    %29 = vector.broadcast %28 : vector<1x1xf32> to vector<1x128xf32>
    %c0_12 = arith.constant 0 : index
    %c0_13 = arith.constant 0 : index
    %30 = vector.load %arg7[%c0_12, %c0_13] : memref<1x128xf32, #tpu.memory_space<vmem>>, vector<1x128xf32>
    tpu.vector_store %arg7[%c0_12, %c0_13], %29 {strides = array<i32>} : memref<1x128xf32, #tpu.memory_space<vmem>>, vector<1x128xf32>,
    return
  }
  func.func @transform_0(%arg0: i32) -> (i32, i32) {
    %c0_i32 = arith.constant 0 : i32
    %c0_i32_0 = arith.constant 0 : i32
    return %arg0, %c0_i32 : i32, i32
  }
  func.func @transform_1(%arg0: i32) -> (i32, i32) {
    %c0_i32 = arith.constant 0 : i32
    %c0_i32_0 = arith.constant 0 : i32
    return %arg0, %c0_i32 : i32, i32
  }
  func.func @transform_2(%arg0: i32) -> (i32, i32) {
    %c0_i32 = arith.constant 0 : i32
    %c0_i32_0 = arith.constant 0 : i32
    return %arg0, %c0_i32 : i32, i32
  }
  func.func @transform_3(%arg0: i32) -> (i32, i32) {
    %c0_i32 = arith.constant 0 : i32
    %c0_i32_0 = arith.constant 0 : i32
    return %arg0, %c0_i32 : i32, i32
  }
  func.func @transform_4(%arg0: i32) -> (i32, i32) {
    %c0_i32 = arith.constant 0 : i32
    %c0_i32_0 = arith.constant 0 : i32
    %c0_i32_1 = arith.constant 0 : i32
    return %c0_i32, %c0_i32_0 : i32, i32
  }
  func.func @transform_5(%arg0: i32) -> (i32, i32) {
    %c0_i32 = arith.constant 0 : i32
    %c0_i32_0 = arith.constant 0 : i32
    return %c0_i32, %arg0 : i32, i32
  }
  func.func @transform_6(%arg0: i32) -> (i32, i32) {
    %c0_i32 = arith.constant 0 : i32
    %c0_i32_0 = arith.constant 0 : i32
    return %c0_i32, %arg0 : i32, i32
  }
}

module attributes {stable_mosaic.version = 11 : i64} {
  func.func @coil_combine_kernel(%arg0: i32, %arg1: i32, %arg2: memref<2x4x128xf32, #tpu.memory_space<vmem>>, %arg3: memref<2x4x128xf32, #tpu.memory_space<vmem>>, %arg4: memref<4x128xf32, #tpu.memory_space<vmem>>, %arg5: memref<4x128xf32, #tpu.memory_space<vmem>>, %arg6: memref<1x128xf32, #tpu.memory_space<vmem>>, %arg7: memref<2x128xf32, #tpu.memory_space<vmem>>, %arg8: memref<2x128xf32, #tpu.memory_space<vmem>>, %arg9: memref<1x128xf32, #tpu.memory_space<vmem>>) attributes {dimension_semantics = [#tpu.dimension_semantics<parallel>, #tpu.dimension_semantics<arbitrary>], iteration_bounds = array<i64: 2, 1>, scalar_prefetch = 0 : i64, scratch_operands = 0 : i64, tpu.core_type = #tpu.core_type<tc>, window_params = [{transform_indices = @transform_0, window_bounds = array<i64: 2, 4, 128>}, {transform_indices = @transform_1, window_bounds = array<i64: 2, 4, 128>}, {transform_indices = @transform_2, window_bounds = array<i64: 4, 128>}, {transform_indices = @transform_3, window_bounds = array<i64: 4, 128>}, {transform_indices = @transform_4, window_bounds = array<i64: 1, 128>}, {transform_indices = @transform_5, window_bounds = array<i64: 2, 128>}, {transform_indices = @transform_6, window_bounds = array<i64: 2, 128>}, {transform_indices = @transform_7, window_bounds = array<i64: 1, 128>}]} {
    %c0_i32 = arith.constant 0 : i32
    %0 = arith.cmpi eq, %arg1, %c0_i32 : i32
    %1 = arith.extui %0 : i1 to i32
    %c0_i32_0 = arith.constant 0 : i32
    %2 = arith.cmpi ne, %1, %c0_i32_0 : i32
    scf.if %2 {
      %cst_21 = arith.constant 0.000000e+00 : f32
      %30 = vector.broadcast %cst_21 : f32 to vector<2x128xf32>
      %c0_22 = arith.constant 0 : index
      %c0_23 = arith.constant 0 : index
      %31 = vector.load %arg7[%c0_22, %c0_23] : memref<2x128xf32, #tpu.memory_space<vmem>>, vector<2x128xf32>
      tpu.vector_store %arg7[%c0_22, %c0_23], %30 {strides = array<i32>} : memref<2x128xf32, #tpu.memory_space<vmem>>, vector<2x128xf32>,
      %cst_24 = arith.constant 0.000000e+00 : f32
      %32 = vector.broadcast %cst_24 : f32 to vector<2x128xf32>
      %c0_25 = arith.constant 0 : index
      %c0_26 = arith.constant 0 : index
      %33 = vector.load %arg8[%c0_25, %c0_26] : memref<2x128xf32, #tpu.memory_space<vmem>>, vector<2x128xf32>
      tpu.vector_store %arg8[%c0_25, %c0_26], %32 {strides = array<i32>} : memref<2x128xf32, #tpu.memory_space<vmem>>, vector<2x128xf32>,
    } else {
    }
    %c0 = arith.constant 0 : index
    %c0_1 = arith.constant 0 : index
    %3 = vector.load %arg4[%c0, %c0_1] : memref<4x128xf32, #tpu.memory_space<vmem>>, vector<4x128xf32>
    %4 = vector.shape_cast %3 : vector<4x128xf32> to vector<1x4x128xf32>
    %c0_2 = arith.constant 0 : index
    %c0_3 = arith.constant 0 : index
    %5 = vector.load %arg5[%c0_2, %c0_3] : memref<4x128xf32, #tpu.memory_space<vmem>>, vector<4x128xf32>
    %6 = vector.shape_cast %5 : vector<4x128xf32> to vector<1x4x128xf32>
    %c0_4 = arith.constant 0 : index
    %c0_5 = arith.constant 0 : index
    %c0_6 = arith.constant 0 : index
    %7 = vector.load %arg2[%c0_4, %c0_5, %c0_6] : memref<2x4x128xf32, #tpu.memory_space<vmem>>, vector<2x4x128xf32>
    %c0_7 = arith.constant 0 : index
    %c0_8 = arith.constant 0 : index
    %c0_9 = arith.constant 0 : index
    %8 = vector.load %arg3[%c0_7, %c0_8, %c0_9] : memref<2x4x128xf32, #tpu.memory_space<vmem>>, vector<2x4x128xf32>
    %c0_10 = arith.constant 0 : index
    %c0_11 = arith.constant 0 : index
    %9 = vector.load %arg7[%c0_10, %c0_11] : memref<2x128xf32, #tpu.memory_space<vmem>>, vector<2x128xf32>
    %10 = vector.broadcast %4 : vector<1x4x128xf32> to vector<2x4x128xf32>
    %11 = arith.mulf %10, %7 : vector<2x4x128xf32>
    %12 = vector.broadcast %6 : vector<1x4x128xf32> to vector<2x4x128xf32>
    %13 = arith.mulf %12, %8 : vector<2x4x128xf32>
    %14 = arith.addf %11, %13 : vector<2x4x128xf32>
    %cst = arith.constant dense<0.000000e+00> : vector<2x128xf32>
    %15 = vector.multi_reduction <add>, %14, %cst [1] : vector<2x4x128xf32> to vector<2x128xf32>
    %16 = arith.addf %9, %15 : vector<2x128xf32>
    %c0_12 = arith.constant 0 : index
    %c0_13 = arith.constant 0 : index
    %17 = vector.load %arg7[%c0_12, %c0_13] : memref<2x128xf32, #tpu.memory_space<vmem>>, vector<2x128xf32>
    tpu.vector_store %arg7[%c0_12, %c0_13], %16 {strides = array<i32>} : memref<2x128xf32, #tpu.memory_space<vmem>>, vector<2x128xf32>,
    %c0_14 = arith.constant 0 : index
    %c0_15 = arith.constant 0 : index
    %18 = vector.load %arg8[%c0_14, %c0_15] : memref<2x128xf32, #tpu.memory_space<vmem>>, vector<2x128xf32>
    %19 = vector.broadcast %4 : vector<1x4x128xf32> to vector<2x4x128xf32>
    %20 = arith.mulf %19, %8 : vector<2x4x128xf32>
    %21 = vector.broadcast %6 : vector<1x4x128xf32> to vector<2x4x128xf32>
    %22 = arith.mulf %21, %7 : vector<2x4x128xf32>
    %23 = arith.subf %20, %22 : vector<2x4x128xf32>
    %cst_16 = arith.constant dense<0.000000e+00> : vector<2x128xf32>
    %24 = vector.multi_reduction <add>, %23, %cst_16 [1] : vector<2x4x128xf32> to vector<2x128xf32>
    %25 = arith.addf %18, %24 : vector<2x128xf32>
    %c0_17 = arith.constant 0 : index
    %c0_18 = arith.constant 0 : index
    %26 = vector.load %arg8[%c0_17, %c0_18] : memref<2x128xf32, #tpu.memory_space<vmem>>, vector<2x128xf32>
    tpu.vector_store %arg8[%c0_17, %c0_18], %25 {strides = array<i32>} : memref<2x128xf32, #tpu.memory_space<vmem>>, vector<2x128xf32>,
    %c0_i32_19 = arith.constant 0 : i32
    %27 = arith.cmpi eq, %arg1, %c0_i32_19 : i32
    %28 = arith.extui %27 : i1 to i32
    %c0_i32_20 = arith.constant 0 : i32
    %29 = arith.cmpi ne, %28, %c0_i32_20 : i32
    scf.if %29 {
      %c0_21 = arith.constant 0 : index
      %c0_22 = arith.constant 0 : index
      %30 = vector.load %arg6[%c0_21, %c0_22] : memref<1x128xf32, #tpu.memory_space<vmem>>, vector<1x128xf32>
      %c0_23 = arith.constant 0 : index
      %c0_24 = arith.constant 0 : index
      %31 = vector.load %arg7[%c0_23, %c0_24] : memref<2x128xf32, #tpu.memory_space<vmem>>, vector<2x128xf32>
      %32 = vector.broadcast %30 : vector<1x128xf32> to vector<2x128xf32>
      %33 = arith.mulf %31, %32 : vector<2x128xf32>
      %c0_25 = arith.constant 0 : index
      %c0_26 = arith.constant 0 : index
      %34 = vector.load %arg8[%c0_25, %c0_26] : memref<2x128xf32, #tpu.memory_space<vmem>>, vector<2x128xf32>
      %35 = vector.broadcast %30 : vector<1x128xf32> to vector<2x128xf32>
      %36 = arith.mulf %34, %35 : vector<2x128xf32>
      %c0_27 = arith.constant 0 : index
      %c0_28 = arith.constant 0 : index
      %37 = vector.load %arg7[%c0_27, %c0_28] : memref<2x128xf32, #tpu.memory_space<vmem>>, vector<2x128xf32>
      tpu.vector_store %arg7[%c0_27, %c0_28], %33 {strides = array<i32>} : memref<2x128xf32, #tpu.memory_space<vmem>>, vector<2x128xf32>,
      %c0_29 = arith.constant 0 : index
      %c0_30 = arith.constant 0 : index
      %38 = vector.load %arg8[%c0_29, %c0_30] : memref<2x128xf32, #tpu.memory_space<vmem>>, vector<2x128xf32>
      tpu.vector_store %arg8[%c0_29, %c0_30], %36 {strides = array<i32>} : memref<2x128xf32, #tpu.memory_space<vmem>>, vector<2x128xf32>,
      %39 = arith.mulf %33, %33 : vector<2x128xf32>
      %40 = arith.mulf %36, %36 : vector<2x128xf32>
      %41 = arith.addf %39, %40 : vector<2x128xf32>
      %42 = vector.shape_cast %41 : vector<2x128xf32> to vector<1x2x128xf32>
      %cst_31 = arith.constant dense<0.000000e+00> : vector<1xf32>
      %43 = vector.multi_reduction <add>, %42, %cst_31 [1, 2] : vector<1x2x128xf32> to vector<1xf32>
      %44 = vector.shape_cast %43 : vector<1xf32> to vector<1x1x1xf32>
      %45 = vector.extract %44[0, 0, 0] : f32 from vector<1x1x1xf32>
      %46 = vector.broadcast %45 : f32 to vector<1x1xf32>
      %47 = vector.shape_cast %46 : vector<1x1xf32> to vector<1x1xf32>
      %48 = vector.broadcast %47 : vector<1x1xf32> to vector<1x128xf32>
      %c0_32 = arith.constant 0 : index
      %c0_33 = arith.constant 0 : index
      %49 = vector.load %arg9[%c0_32, %c0_33] : memref<1x128xf32, #tpu.memory_space<vmem>>, vector<1x128xf32>
      tpu.vector_store %arg9[%c0_32, %c0_33], %48 {strides = array<i32>} : memref<1x128xf32, #tpu.memory_space<vmem>>, vector<1x128xf32>,
    } else {
    }
    return
  }
  func.func @transform_0(%arg0: i32, %arg1: i32) -> (i32, i32, i32) {
    %c0_i32 = arith.constant 0 : i32
    %c0_i32_0 = arith.constant 0 : i32
    return %c0_i32, %arg1, %arg0 : i32, i32, i32
  }
  func.func @transform_1(%arg0: i32, %arg1: i32) -> (i32, i32, i32) {
    %c0_i32 = arith.constant 0 : i32
    %c0_i32_0 = arith.constant 0 : i32
    return %c0_i32, %arg1, %arg0 : i32, i32, i32
  }
  func.func @transform_2(%arg0: i32, %arg1: i32) -> (i32, i32) {
    %c0_i32 = arith.constant 0 : i32
    return %arg1, %arg0 : i32, i32
  }
  func.func @transform_3(%arg0: i32, %arg1: i32) -> (i32, i32) {
    %c0_i32 = arith.constant 0 : i32
    return %arg1, %arg0 : i32, i32
  }
  func.func @transform_4(%arg0: i32, %arg1: i32) -> (i32, i32) {
    %c0_i32 = arith.constant 0 : i32
    %c0_i32_0 = arith.constant 0 : i32
    return %c0_i32, %arg0 : i32, i32
  }
  func.func @transform_5(%arg0: i32, %arg1: i32) -> (i32, i32) {
    %c0_i32 = arith.constant 0 : i32
    %c0_i32_0 = arith.constant 0 : i32
    return %c0_i32, %arg0 : i32, i32
  }
  func.func @transform_6(%arg0: i32, %arg1: i32) -> (i32, i32) {
    %c0_i32 = arith.constant 0 : i32
    %c0_i32_0 = arith.constant 0 : i32
    return %c0_i32, %arg0 : i32, i32
  }
  func.func @transform_7(%arg0: i32, %arg1: i32) -> (i32, i32) {
    %c0_i32 = arith.constant 0 : i32
    %c0_i32_0 = arith.constant 0 : i32
    return %c0_i32, %arg0 : i32, i32
  }
}

module attributes {stable_mosaic.version = 11 : i64} {
  func.func @dc_mod_kernel(%arg0: i32, %arg1: memref<1x1xf32, #tpu.memory_space<smem>>, %arg2: memref<8x256xf32, #tpu.memory_space<vmem>>, %arg3: memref<8x256xf32, #tpu.memory_space<vmem>>, %arg4: memref<8x256xf32, #tpu.memory_space<vmem>>, %arg5: memref<8x256xf32, #tpu.memory_space<vmem>>, %arg6: memref<8x256xf32, #tpu.memory_space<vmem>>, %arg7: memref<8x256xf32, #tpu.memory_space<vmem>>, %arg8: memref<1x256xf32, #tpu.memory_space<vmem>>, %arg9: memref<1x256xf32, #tpu.memory_space<vmem>>, %arg10: memref<8x256xf32, #tpu.memory_space<vmem>>, %arg11: memref<8x256xf32, #tpu.memory_space<vmem>>) attributes {dimension_semantics = [#tpu.dimension_semantics<parallel>], iteration_bounds = array<i64: 1>, scalar_prefetch = 0 : i64, scratch_operands = 0 : i64, tpu.core_type = #tpu.core_type<tc>, window_params = [{transform_indices = @transform_0, window_bounds = array<i64: 1, 1>}, {transform_indices = @transform_1, window_bounds = array<i64: 8, 256>}, {transform_indices = @transform_2, window_bounds = array<i64: 8, 256>}, {transform_indices = @transform_3, window_bounds = array<i64: 8, 256>}, {transform_indices = @transform_4, window_bounds = array<i64: 8, 256>}, {transform_indices = @transform_5, window_bounds = array<i64: 8, 256>}, {transform_indices = @transform_6, window_bounds = array<i64: 8, 256>}, {pipeline_mode = #tpu.pipeline_mode<synchronous>, transform_indices = @transform_7, window_bounds = array<i64: 1, 256>}, {pipeline_mode = #tpu.pipeline_mode<synchronous>, transform_indices = @transform_8, window_bounds = array<i64: 1, 256>}, {transform_indices = @transform_9, window_bounds = array<i64: 8, 256>}, {transform_indices = @transform_10, window_bounds = array<i64: 8, 256>}]} {
    %c0 = arith.constant 0 : index
    %c0_0 = arith.constant 0 : index
    %0 = memref.load %arg1[%c0, %c0_0] : memref<1x1xf32, #tpu.memory_space<smem>>
    %c0_1 = arith.constant 0 : index
    %c0_2 = arith.constant 0 : index
    %1 = vector.load %arg8[%c0_1, %c0_2] : memref<1x256xf32, #tpu.memory_space<vmem>>, vector<1x256xf32>
    %c0_3 = arith.constant 0 : index
    %c0_4 = arith.constant 0 : index
    %2 = vector.load %arg9[%c0_3, %c0_4] : memref<1x256xf32, #tpu.memory_space<vmem>>, vector<1x256xf32>
    %c0_5 = arith.constant 0 : index
    %c0_6 = arith.constant 0 : index
    %3 = vector.load %arg6[%c0_5, %c0_6] : memref<8x256xf32, #tpu.memory_space<vmem>>, vector<8x256xf32>
    %4 = vector.broadcast %1 : vector<1x256xf32> to vector<8x256xf32>
    %5 = arith.mulf %4, %3 : vector<8x256xf32>
    %c0_7 = arith.constant 0 : index
    %c0_8 = arith.constant 0 : index
    %6 = vector.load %arg2[%c0_7, %c0_8] : memref<8x256xf32, #tpu.memory_space<vmem>>, vector<8x256xf32>
    %c0_9 = arith.constant 0 : index
    %c0_10 = arith.constant 0 : index
    %7 = vector.load %arg4[%c0_9, %c0_10] : memref<8x256xf32, #tpu.memory_space<vmem>>, vector<8x256xf32>
    %8 = vector.broadcast %0 : f32 to vector<8x256xf32>
    %9 = arith.mulf %8, %7 : vector<8x256xf32>
    %10 = arith.subf %6, %9 : vector<8x256xf32>
    %11 = vector.broadcast %2 : vector<1x256xf32> to vector<8x256xf32>
    %12 = arith.mulf %11, %10 : vector<8x256xf32>
    %13 = arith.addf %5, %12 : vector<8x256xf32>
    %c0_11 = arith.constant 0 : index
    %c0_12 = arith.constant 0 : index
    %14 = vector.load %arg10[%c0_11, %c0_12] : memref<8x256xf32, #tpu.memory_space<vmem>>, vector<8x256xf32>
    tpu.vector_store %arg10[%c0_11, %c0_12], %13 {strides = array<i32>} : memref<8x256xf32, #tpu.memory_space<vmem>>, vector<8x256xf32>,
    %c0_13 = arith.constant 0 : index
    %c0_14 = arith.constant 0 : index
    %15 = vector.load %arg7[%c0_13, %c0_14] : memref<8x256xf32, #tpu.memory_space<vmem>>, vector<8x256xf32>
    %16 = vector.broadcast %1 : vector<1x256xf32> to vector<8x256xf32>
    %17 = arith.mulf %16, %15 : vector<8x256xf32>
    %c0_15 = arith.constant 0 : index
    %c0_16 = arith.constant 0 : index
    %18 = vector.load %arg3[%c0_15, %c0_16] : memref<8x256xf32, #tpu.memory_space<vmem>>, vector<8x256xf32>
    %c0_17 = arith.constant 0 : index
    %c0_18 = arith.constant 0 : index
    %19 = vector.load %arg5[%c0_17, %c0_18] : memref<8x256xf32, #tpu.memory_space<vmem>>, vector<8x256xf32>
    %20 = vector.broadcast %0 : f32 to vector<8x256xf32>
    %21 = arith.mulf %20, %19 : vector<8x256xf32>
    %22 = arith.subf %18, %21 : vector<8x256xf32>
    %23 = vector.broadcast %2 : vector<1x256xf32> to vector<8x256xf32>
    %24 = arith.mulf %23, %22 : vector<8x256xf32>
    %25 = arith.addf %17, %24 : vector<8x256xf32>
    %c0_19 = arith.constant 0 : index
    %c0_20 = arith.constant 0 : index
    %26 = vector.load %arg11[%c0_19, %c0_20] : memref<8x256xf32, #tpu.memory_space<vmem>>, vector<8x256xf32>
    tpu.vector_store %arg11[%c0_19, %c0_20], %25 {strides = array<i32>} : memref<8x256xf32, #tpu.memory_space<vmem>>, vector<8x256xf32>,
    return
  }
  func.func @transform_0(%arg0: i32) -> (i32, i32) {
    %c0_i32 = arith.constant 0 : i32
    %c0_i32_0 = arith.constant 0 : i32
    %c0_i32_1 = arith.constant 0 : i32
    return %c0_i32, %c0_i32_0 : i32, i32
  }
  func.func @transform_1(%arg0: i32) -> (i32, i32) {
    %c0_i32 = arith.constant 0 : i32
    %c0_i32_0 = arith.constant 0 : i32
    return %arg0, %c0_i32 : i32, i32
  }
  func.func @transform_2(%arg0: i32) -> (i32, i32) {
    %c0_i32 = arith.constant 0 : i32
    %c0_i32_0 = arith.constant 0 : i32
    return %arg0, %c0_i32 : i32, i32
  }
  func.func @transform_3(%arg0: i32) -> (i32, i32) {
    %c0_i32 = arith.constant 0 : i32
    %c0_i32_0 = arith.constant 0 : i32
    return %arg0, %c0_i32 : i32, i32
  }
  func.func @transform_4(%arg0: i32) -> (i32, i32) {
    %c0_i32 = arith.constant 0 : i32
    %c0_i32_0 = arith.constant 0 : i32
    return %arg0, %c0_i32 : i32, i32
  }
  func.func @transform_5(%arg0: i32) -> (i32, i32) {
    %c0_i32 = arith.constant 0 : i32
    %c0_i32_0 = arith.constant 0 : i32
    return %arg0, %c0_i32 : i32, i32
  }
  func.func @transform_6(%arg0: i32) -> (i32, i32) {
    %c0_i32 = arith.constant 0 : i32
    %c0_i32_0 = arith.constant 0 : i32
    return %arg0, %c0_i32 : i32, i32
  }
  func.func @transform_7(%arg0: i32) -> (i32, i32) {
    %c0_i32 = arith.constant 0 : i32
    %c0_i32_0 = arith.constant 0 : i32
    %c0_i32_1 = arith.constant 0 : i32
    return %c0_i32, %c0_i32_0 : i32, i32
  }
  func.func @transform_8(%arg0: i32) -> (i32, i32) {
    %c0_i32 = arith.constant 0 : i32
    %c0_i32_0 = arith.constant 0 : i32
    %c0_i32_1 = arith.constant 0 : i32
    return %c0_i32, %c0_i32_0 : i32, i32
  }
  func.func @transform_9(%arg0: i32) -> (i32, i32) {
    %c0_i32 = arith.constant 0 : i32
    %c0_i32_0 = arith.constant 0 : i32
    return %arg0, %c0_i32 : i32, i32
  }
  func.func @transform_10(%arg0: i32) -> (i32, i32) {
    %c0_i32 = arith.constant 0 : i32
    %c0_i32_0 = arith.constant 0 : i32
    return %arg0, %c0_i32 : i32, i32
  }
}

module attributes {stable_mosaic.version = 11 : i64} {
  func.func @coil_combine_kernel(%arg0: i32, %arg1: i32, %arg2: memref<2x4x128xf32, #tpu.memory_space<vmem>>, %arg3: memref<2x4x128xf32, #tpu.memory_space<vmem>>, %arg4: memref<4x128xf32, #tpu.memory_space<vmem>>, %arg5: memref<4x128xf32, #tpu.memory_space<vmem>>, %arg6: memref<1x128xf32, #tpu.memory_space<vmem>>, %arg7: memref<2x128xf32, #tpu.memory_space<vmem>>, %arg8: memref<2x128xf32, #tpu.memory_space<vmem>>, %arg9: memref<1x128xf32, #tpu.memory_space<vmem>>) attributes {dimension_semantics = [#tpu.dimension_semantics<parallel>, #tpu.dimension_semantics<arbitrary>], iteration_bounds = array<i64: 2, 1>, scalar_prefetch = 0 : i64, scratch_operands = 0 : i64, tpu.core_type = #tpu.core_type<tc>, window_params = [{transform_indices = @transform_0, window_bounds = array<i64: 2, 4, 128>}, {transform_indices = @transform_1, window_bounds = array<i64: 2, 4, 128>}, {transform_indices = @transform_2, window_bounds = array<i64: 4, 128>}, {transform_indices = @transform_3, window_bounds = array<i64: 4, 128>}, {transform_indices = @transform_4, window_bounds = array<i64: 1, 128>}, {transform_indices = @transform_5, window_bounds = array<i64: 2, 128>}, {transform_indices = @transform_6, window_bounds = array<i64: 2, 128>}, {transform_indices = @transform_7, window_bounds = array<i64: 1, 128>}]} {
    %c0_i32 = arith.constant 0 : i32
    %0 = arith.cmpi eq, %arg1, %c0_i32 : i32
    %1 = arith.extui %0 : i1 to i32
    %c0_i32_0 = arith.constant 0 : i32
    %2 = arith.cmpi ne, %1, %c0_i32_0 : i32
    scf.if %2 {
      %cst_21 = arith.constant 0.000000e+00 : f32
      %30 = vector.broadcast %cst_21 : f32 to vector<2x128xf32>
      %c0_22 = arith.constant 0 : index
      %c0_23 = arith.constant 0 : index
      %31 = vector.load %arg7[%c0_22, %c0_23] : memref<2x128xf32, #tpu.memory_space<vmem>>, vector<2x128xf32>
      tpu.vector_store %arg7[%c0_22, %c0_23], %30 {strides = array<i32>} : memref<2x128xf32, #tpu.memory_space<vmem>>, vector<2x128xf32>,
      %cst_24 = arith.constant 0.000000e+00 : f32
      %32 = vector.broadcast %cst_24 : f32 to vector<2x128xf32>
      %c0_25 = arith.constant 0 : index
      %c0_26 = arith.constant 0 : index
      %33 = vector.load %arg8[%c0_25, %c0_26] : memref<2x128xf32, #tpu.memory_space<vmem>>, vector<2x128xf32>
      tpu.vector_store %arg8[%c0_25, %c0_26], %32 {strides = array<i32>} : memref<2x128xf32, #tpu.memory_space<vmem>>, vector<2x128xf32>,
    } else {
    }
    %c0 = arith.constant 0 : index
    %c0_1 = arith.constant 0 : index
    %3 = vector.load %arg4[%c0, %c0_1] : memref<4x128xf32, #tpu.memory_space<vmem>>, vector<4x128xf32>
    %4 = vector.shape_cast %3 : vector<4x128xf32> to vector<1x4x128xf32>
    %c0_2 = arith.constant 0 : index
    %c0_3 = arith.constant 0 : index
    %5 = vector.load %arg5[%c0_2, %c0_3] : memref<4x128xf32, #tpu.memory_space<vmem>>, vector<4x128xf32>
    %6 = vector.shape_cast %5 : vector<4x128xf32> to vector<1x4x128xf32>
    %c0_4 = arith.constant 0 : index
    %c0_5 = arith.constant 0 : index
    %c0_6 = arith.constant 0 : index
    %7 = vector.load %arg2[%c0_4, %c0_5, %c0_6] : memref<2x4x128xf32, #tpu.memory_space<vmem>>, vector<2x4x128xf32>
    %c0_7 = arith.constant 0 : index
    %c0_8 = arith.constant 0 : index
    %c0_9 = arith.constant 0 : index
    %8 = vector.load %arg3[%c0_7, %c0_8, %c0_9] : memref<2x4x128xf32, #tpu.memory_space<vmem>>, vector<2x4x128xf32>
    %c0_10 = arith.constant 0 : index
    %c0_11 = arith.constant 0 : index
    %9 = vector.load %arg7[%c0_10, %c0_11] : memref<2x128xf32, #tpu.memory_space<vmem>>, vector<2x128xf32>
    %10 = vector.broadcast %4 : vector<1x4x128xf32> to vector<2x4x128xf32>
    %11 = arith.mulf %10, %7 : vector<2x4x128xf32>
    %12 = vector.broadcast %6 : vector<1x4x128xf32> to vector<2x4x128xf32>
    %13 = arith.mulf %12, %8 : vector<2x4x128xf32>
    %14 = arith.addf %11, %13 : vector<2x4x128xf32>
    %cst = arith.constant dense<0.000000e+00> : vector<2x128xf32>
    %15 = vector.multi_reduction <add>, %14, %cst [1] : vector<2x4x128xf32> to vector<2x128xf32>
    %16 = arith.addf %9, %15 : vector<2x128xf32>
    %c0_12 = arith.constant 0 : index
    %c0_13 = arith.constant 0 : index
    %17 = vector.load %arg7[%c0_12, %c0_13] : memref<2x128xf32, #tpu.memory_space<vmem>>, vector<2x128xf32>
    tpu.vector_store %arg7[%c0_12, %c0_13], %16 {strides = array<i32>} : memref<2x128xf32, #tpu.memory_space<vmem>>, vector<2x128xf32>,
    %c0_14 = arith.constant 0 : index
    %c0_15 = arith.constant 0 : index
    %18 = vector.load %arg8[%c0_14, %c0_15] : memref<2x128xf32, #tpu.memory_space<vmem>>, vector<2x128xf32>
    %19 = vector.broadcast %4 : vector<1x4x128xf32> to vector<2x4x128xf32>
    %20 = arith.mulf %19, %8 : vector<2x4x128xf32>
    %21 = vector.broadcast %6 : vector<1x4x128xf32> to vector<2x4x128xf32>
    %22 = arith.mulf %21, %7 : vector<2x4x128xf32>
    %23 = arith.subf %20, %22 : vector<2x4x128xf32>
    %cst_16 = arith.constant dense<0.000000e+00> : vector<2x128xf32>
    %24 = vector.multi_reduction <add>, %23, %cst_16 [1] : vector<2x4x128xf32> to vector<2x128xf32>
    %25 = arith.addf %18, %24 : vector<2x128xf32>
    %c0_17 = arith.constant 0 : index
    %c0_18 = arith.constant 0 : index
    %26 = vector.load %arg8[%c0_17, %c0_18] : memref<2x128xf32, #tpu.memory_space<vmem>>, vector<2x128xf32>
    tpu.vector_store %arg8[%c0_17, %c0_18], %25 {strides = array<i32>} : memref<2x128xf32, #tpu.memory_space<vmem>>, vector<2x128xf32>,
    %c0_i32_19 = arith.constant 0 : i32
    %27 = arith.cmpi eq, %arg1, %c0_i32_19 : i32
    %28 = arith.extui %27 : i1 to i32
    %c0_i32_20 = arith.constant 0 : i32
    %29 = arith.cmpi ne, %28, %c0_i32_20 : i32
    scf.if %29 {
      %c0_21 = arith.constant 0 : index
      %c0_22 = arith.constant 0 : index
      %30 = vector.load %arg6[%c0_21, %c0_22] : memref<1x128xf32, #tpu.memory_space<vmem>>, vector<1x128xf32>
      %c0_23 = arith.constant 0 : index
      %c0_24 = arith.constant 0 : index
      %31 = vector.load %arg7[%c0_23, %c0_24] : memref<2x128xf32, #tpu.memory_space<vmem>>, vector<2x128xf32>
      %32 = vector.broadcast %30 : vector<1x128xf32> to vector<2x128xf32>
      %33 = arith.mulf %31, %32 : vector<2x128xf32>
      %c0_25 = arith.constant 0 : index
      %c0_26 = arith.constant 0 : index
      %34 = vector.load %arg8[%c0_25, %c0_26] : memref<2x128xf32, #tpu.memory_space<vmem>>, vector<2x128xf32>
      %35 = vector.broadcast %30 : vector<1x128xf32> to vector<2x128xf32>
      %36 = arith.mulf %34, %35 : vector<2x128xf32>
      %c0_27 = arith.constant 0 : index
      %c0_28 = arith.constant 0 : index
      %37 = vector.load %arg7[%c0_27, %c0_28] : memref<2x128xf32, #tpu.memory_space<vmem>>, vector<2x128xf32>
      tpu.vector_store %arg7[%c0_27, %c0_28], %33 {strides = array<i32>} : memref<2x128xf32, #tpu.memory_space<vmem>>, vector<2x128xf32>,
      %c0_29 = arith.constant 0 : index
      %c0_30 = arith.constant 0 : index
      %38 = vector.load %arg8[%c0_29, %c0_30] : memref<2x128xf32, #tpu.memory_space<vmem>>, vector<2x128xf32>
      tpu.vector_store %arg8[%c0_29, %c0_30], %36 {strides = array<i32>} : memref<2x128xf32, #tpu.memory_space<vmem>>, vector<2x128xf32>,
      %39 = arith.mulf %33, %33 : vector<2x128xf32>
      %40 = arith.mulf %36, %36 : vector<2x128xf32>
      %41 = arith.addf %39, %40 : vector<2x128xf32>
      %42 = vector.shape_cast %41 : vector<2x128xf32> to vector<1x2x128xf32>
      %cst_31 = arith.constant dense<0.000000e+00> : vector<1xf32>
      %43 = vector.multi_reduction <add>, %42, %cst_31 [1, 2] : vector<1x2x128xf32> to vector<1xf32>
      %44 = vector.shape_cast %43 : vector<1xf32> to vector<1x1x1xf32>
      %45 = vector.extract %44[0, 0, 0] : f32 from vector<1x1x1xf32>
      %46 = vector.broadcast %45 : f32 to vector<1x1xf32>
      %47 = vector.shape_cast %46 : vector<1x1xf32> to vector<1x1xf32>
      %48 = vector.broadcast %47 : vector<1x1xf32> to vector<1x128xf32>
      %c0_32 = arith.constant 0 : index
      %c0_33 = arith.constant 0 : index
      %49 = vector.load %arg9[%c0_32, %c0_33] : memref<1x128xf32, #tpu.memory_space<vmem>>, vector<1x128xf32>
      tpu.vector_store %arg9[%c0_32, %c0_33], %48 {strides = array<i32>} : memref<1x128xf32, #tpu.memory_space<vmem>>, vector<1x128xf32>,
    } else {
    }
    return
  }
  func.func @transform_0(%arg0: i32, %arg1: i32) -> (i32, i32, i32) {
    %c0_i32 = arith.constant 0 : i32
    %c0_i32_0 = arith.constant 0 : i32
    return %c0_i32, %arg1, %arg0 : i32, i32, i32
  }
  func.func @transform_1(%arg0: i32, %arg1: i32) -> (i32, i32, i32) {
    %c0_i32 = arith.constant 0 : i32
    %c0_i32_0 = arith.constant 0 : i32
    return %c0_i32, %arg1, %arg0 : i32, i32, i32
  }
  func.func @transform_2(%arg0: i32, %arg1: i32) -> (i32, i32) {
    %c0_i32 = arith.constant 0 : i32
    return %arg1, %arg0 : i32, i32
  }
  func.func @transform_3(%arg0: i32, %arg1: i32) -> (i32, i32) {
    %c0_i32 = arith.constant 0 : i32
    return %arg1, %arg0 : i32, i32
  }
  func.func @transform_4(%arg0: i32, %arg1: i32) -> (i32, i32) {
    %c0_i32 = arith.constant 0 : i32
    %c0_i32_0 = arith.constant 0 : i32
    return %c0_i32, %arg0 : i32, i32
  }
  func.func @transform_5(%arg0: i32, %arg1: i32) -> (i32, i32) {
    %c0_i32 = arith.constant 0 : i32
    %c0_i32_0 = arith.constant 0 : i32
    return %c0_i32, %arg0 : i32, i32
  }
  func.func @transform_6(%arg0: i32, %arg1: i32) -> (i32, i32) {
    %c0_i32 = arith.constant 0 : i32
    %c0_i32_0 = arith.constant 0 : i32
    return %c0_i32, %arg0 : i32, i32
  }
  func.func @transform_7(%arg0: i32, %arg1: i32) -> (i32, i32) {
    %c0_i32 = arith.constant 0 : i32
    %c0_i32_0 = arith.constant 0 : i32
    return %c0_i32, %arg0 : i32, i32
  }
}

module attributes {stable_mosaic.version = 11 : i64} {
  func.func @pixel_mlp_kernel(%arg0: i32, %arg1: memref<2x256xf32, #tpu.memory_space<vmem>>, %arg2: memref<2x256xf32, #tpu.memory_space<vmem>>, %arg3: memref<2x8xf32, #tpu.memory_space<smem>>, %arg4: memref<1x8xf32, #tpu.memory_space<smem>>, %arg5: memref<8x2xf32, #tpu.memory_space<smem>>, %arg6: memref<1x2xf32, #tpu.memory_space<smem>>, %arg7: memref<2x256xf32, #tpu.memory_space<vmem>>, %arg8: memref<2x256xf32, #tpu.memory_space<vmem>>) attributes {dimension_semantics = [#tpu.dimension_semantics<parallel>], iteration_bounds = array<i64: 1>, scalar_prefetch = 0 : i64, scratch_operands = 0 : i64, tpu.core_type = #tpu.core_type<tc>, window_params = [{transform_indices = @transform_0, window_bounds = array<i64: 2, 256>}, {transform_indices = @transform_1, window_bounds = array<i64: 2, 256>}, {transform_indices = @transform_2, window_bounds = array<i64: 2, 8>}, {transform_indices = @transform_3, window_bounds = array<i64: 1, 8>}, {transform_indices = @transform_4, window_bounds = array<i64: 8, 2>}, {transform_indices = @transform_5, window_bounds = array<i64: 1, 2>}, {transform_indices = @transform_6, window_bounds = array<i64: 2, 256>}, {transform_indices = @transform_7, window_bounds = array<i64: 2, 256>}]} {
    %c0 = arith.constant 0 : index
    %c0_0 = arith.constant 0 : index
    %0 = vector.load %arg1[%c0, %c0_0] : memref<2x256xf32, #tpu.memory_space<vmem>>, vector<2x256xf32>
    %c0_1 = arith.constant 0 : index
    %c0_2 = arith.constant 0 : index
    %1 = vector.load %arg2[%c0_1, %c0_2] : memref<2x256xf32, #tpu.memory_space<vmem>>, vector<2x256xf32>
    %c0_3 = arith.constant 0 : index
    %c0_4 = arith.constant 0 : index
    %2 = memref.load %arg6[%c0_3, %c0_4] : memref<1x2xf32, #tpu.memory_space<smem>>
    %3 = vector.broadcast %2 : f32 to vector<2x256xf32>
    %c0_5 = arith.constant 0 : index
    %c1 = arith.constant 1 : index
    %4 = memref.load %arg6[%c0_5, %c1] : memref<1x2xf32, #tpu.memory_space<smem>>
    %5 = vector.broadcast %4 : f32 to vector<2x256xf32>
    %c0_6 = arith.constant 0 : index
    %c0_7 = arith.constant 0 : index
    %6 = memref.load %arg3[%c0_6, %c0_7] : memref<2x8xf32, #tpu.memory_space<smem>>
    %7 = vector.broadcast %6 : f32 to vector<2x256xf32>
    %8 = arith.mulf %0, %7 : vector<2x256xf32>
    %c1_8 = arith.constant 1 : index
    %c0_9 = arith.constant 0 : index
    %9 = memref.load %arg3[%c1_8, %c0_9] : memref<2x8xf32, #tpu.memory_space<smem>>
    %10 = vector.broadcast %9 : f32 to vector<2x256xf32>
    %11 = arith.mulf %1, %10 : vector<2x256xf32>
    %12 = arith.addf %8, %11 : vector<2x256xf32>
    %c0_10 = arith.constant 0 : index
    %c0_11 = arith.constant 0 : index
    %13 = memref.load %arg4[%c0_10, %c0_11] : memref<1x8xf32, #tpu.memory_space<smem>>
    %14 = vector.broadcast %13 : f32 to vector<2x256xf32>
    %15 = arith.addf %12, %14 : vector<2x256xf32>
    %cst = arith.constant 0.000000e+00 : f32
    %16 = vector.broadcast %cst : f32 to vector<2x256xf32>
    %17 = arith.maximumf %15, %16 : vector<2x256xf32>
    %c0_12 = arith.constant 0 : index
    %c0_13 = arith.constant 0 : index
    %18 = memref.load %arg5[%c0_12, %c0_13] : memref<8x2xf32, #tpu.memory_space<smem>>
    %19 = vector.broadcast %18 : f32 to vector<2x256xf32>
    %20 = arith.mulf %17, %19 : vector<2x256xf32>
    %21 = arith.addf %3, %20 : vector<2x256xf32>
    %c0_14 = arith.constant 0 : index
    %c1_15 = arith.constant 1 : index
    %22 = memref.load %arg5[%c0_14, %c1_15] : memref<8x2xf32, #tpu.memory_space<smem>>
    %23 = vector.broadcast %22 : f32 to vector<2x256xf32>
    %24 = arith.mulf %17, %23 : vector<2x256xf32>
    %25 = arith.addf %5, %24 : vector<2x256xf32>
    %c0_16 = arith.constant 0 : index
    %c1_17 = arith.constant 1 : index
    %26 = memref.load %arg3[%c0_16, %c1_17] : memref<2x8xf32, #tpu.memory_space<smem>>
    %27 = vector.broadcast %26 : f32 to vector<2x256xf32>
    %28 = arith.mulf %0, %27 : vector<2x256xf32>
    %c1_18 = arith.constant 1 : index
    %c1_19 = arith.constant 1 : index
    %29 = memref.load %arg3[%c1_18, %c1_19] : memref<2x8xf32, #tpu.memory_space<smem>>
    %30 = vector.broadcast %29 : f32 to vector<2x256xf32>
    %31 = arith.mulf %1, %30 : vector<2x256xf32>
    %32 = arith.addf %28, %31 : vector<2x256xf32>
    %c0_20 = arith.constant 0 : index
    %c1_21 = arith.constant 1 : index
    %33 = memref.load %arg4[%c0_20, %c1_21] : memref<1x8xf32, #tpu.memory_space<smem>>
    %34 = vector.broadcast %33 : f32 to vector<2x256xf32>
    %35 = arith.addf %32, %34 : vector<2x256xf32>
    %cst_22 = arith.constant 0.000000e+00 : f32
    %36 = vector.broadcast %cst_22 : f32 to vector<2x256xf32>
    %37 = arith.maximumf %35, %36 : vector<2x256xf32>
    %c1_23 = arith.constant 1 : index
    %c0_24 = arith.constant 0 : index
    %38 = memref.load %arg5[%c1_23, %c0_24] : memref<8x2xf32, #tpu.memory_space<smem>>
    %39 = vector.broadcast %38 : f32 to vector<2x256xf32>
    %40 = arith.mulf %37, %39 : vector<2x256xf32>
    %41 = arith.addf %21, %40 : vector<2x256xf32>
    %c1_25 = arith.constant 1 : index
    %c1_26 = arith.constant 1 : index
    %42 = memref.load %arg5[%c1_25, %c1_26] : memref<8x2xf32, #tpu.memory_space<smem>>
    %43 = vector.broadcast %42 : f32 to vector<2x256xf32>
    %44 = arith.mulf %37, %43 : vector<2x256xf32>
    %45 = arith.addf %25, %44 : vector<2x256xf32>
    %c0_27 = arith.constant 0 : index
    %c2 = arith.constant 2 : index
    %46 = memref.load %arg3[%c0_27, %c2] : memref<2x8xf32, #tpu.memory_space<smem>>
    %47 = vector.broadcast %46 : f32 to vector<2x256xf32>
    %48 = arith.mulf %0, %47 : vector<2x256xf32>
    %c1_28 = arith.constant 1 : index
    %c2_29 = arith.constant 2 : index
    %49 = memref.load %arg3[%c1_28, %c2_29] : memref<2x8xf32, #tpu.memory_space<smem>>
    %50 = vector.broadcast %49 : f32 to vector<2x256xf32>
    %51 = arith.mulf %1, %50 : vector<2x256xf32>
    %52 = arith.addf %48, %51 : vector<2x256xf32>
    %c0_30 = arith.constant 0 : index
    %c2_31 = arith.constant 2 : index
    %53 = memref.load %arg4[%c0_30, %c2_31] : memref<1x8xf32, #tpu.memory_space<smem>>
    %54 = vector.broadcast %53 : f32 to vector<2x256xf32>
    %55 = arith.addf %52, %54 : vector<2x256xf32>
    %cst_32 = arith.constant 0.000000e+00 : f32
    %56 = vector.broadcast %cst_32 : f32 to vector<2x256xf32>
    %57 = arith.maximumf %55, %56 : vector<2x256xf32>
    %c2_33 = arith.constant 2 : index
    %c0_34 = arith.constant 0 : index
    %58 = memref.load %arg5[%c2_33, %c0_34] : memref<8x2xf32, #tpu.memory_space<smem>>
    %59 = vector.broadcast %58 : f32 to vector<2x256xf32>
    %60 = arith.mulf %57, %59 : vector<2x256xf32>
    %61 = arith.addf %41, %60 : vector<2x256xf32>
    %c2_35 = arith.constant 2 : index
    %c1_36 = arith.constant 1 : index
    %62 = memref.load %arg5[%c2_35, %c1_36] : memref<8x2xf32, #tpu.memory_space<smem>>
    %63 = vector.broadcast %62 : f32 to vector<2x256xf32>
    %64 = arith.mulf %57, %63 : vector<2x256xf32>
    %65 = arith.addf %45, %64 : vector<2x256xf32>
    %c0_37 = arith.constant 0 : index
    %c3 = arith.constant 3 : index
    %66 = memref.load %arg3[%c0_37, %c3] : memref<2x8xf32, #tpu.memory_space<smem>>
    %67 = vector.broadcast %66 : f32 to vector<2x256xf32>
    %68 = arith.mulf %0, %67 : vector<2x256xf32>
    %c1_38 = arith.constant 1 : index
    %c3_39 = arith.constant 3 : index
    %69 = memref.load %arg3[%c1_38, %c3_39] : memref<2x8xf32, #tpu.memory_space<smem>>
    %70 = vector.broadcast %69 : f32 to vector<2x256xf32>
    %71 = arith.mulf %1, %70 : vector<2x256xf32>
    %72 = arith.addf %68, %71 : vector<2x256xf32>
    %c0_40 = arith.constant 0 : index
    %c3_41 = arith.constant 3 : index
    %73 = memref.load %arg4[%c0_40, %c3_41] : memref<1x8xf32, #tpu.memory_space<smem>>
    %74 = vector.broadcast %73 : f32 to vector<2x256xf32>
    %75 = arith.addf %72, %74 : vector<2x256xf32>
    %cst_42 = arith.constant 0.000000e+00 : f32
    %76 = vector.broadcast %cst_42 : f32 to vector<2x256xf32>
    %77 = arith.maximumf %75, %76 : vector<2x256xf32>
    %c3_43 = arith.constant 3 : index
    %c0_44 = arith.constant 0 : index
    %78 = memref.load %arg5[%c3_43, %c0_44] : memref<8x2xf32, #tpu.memory_space<smem>>
    %79 = vector.broadcast %78 : f32 to vector<2x256xf32>
    %80 = arith.mulf %77, %79 : vector<2x256xf32>
    %81 = arith.addf %61, %80 : vector<2x256xf32>
    %c3_45 = arith.constant 3 : index
    %c1_46 = arith.constant 1 : index
    %82 = memref.load %arg5[%c3_45, %c1_46] : memref<8x2xf32, #tpu.memory_space<smem>>
    %83 = vector.broadcast %82 : f32 to vector<2x256xf32>
    %84 = arith.mulf %77, %83 : vector<2x256xf32>
    %85 = arith.addf %65, %84 : vector<2x256xf32>
    %c0_47 = arith.constant 0 : index
    %c4 = arith.constant 4 : index
    %86 = memref.load %arg3[%c0_47, %c4] : memref<2x8xf32, #tpu.memory_space<smem>>
    %87 = vector.broadcast %86 : f32 to vector<2x256xf32>
    %88 = arith.mulf %0, %87 : vector<2x256xf32>
    %c1_48 = arith.constant 1 : index
    %c4_49 = arith.constant 4 : index
    %89 = memref.load %arg3[%c1_48, %c4_49] : memref<2x8xf32, #tpu.memory_space<smem>>
    %90 = vector.broadcast %89 : f32 to vector<2x256xf32>
    %91 = arith.mulf %1, %90 : vector<2x256xf32>
    %92 = arith.addf %88, %91 : vector<2x256xf32>
    %c0_50 = arith.constant 0 : index
    %c4_51 = arith.constant 4 : index
    %93 = memref.load %arg4[%c0_50, %c4_51] : memref<1x8xf32, #tpu.memory_space<smem>>
    %94 = vector.broadcast %93 : f32 to vector<2x256xf32>
    %95 = arith.addf %92, %94 : vector<2x256xf32>
    %cst_52 = arith.constant 0.000000e+00 : f32
    %96 = vector.broadcast %cst_52 : f32 to vector<2x256xf32>
    %97 = arith.maximumf %95, %96 : vector<2x256xf32>
    %c4_53 = arith.constant 4 : index
    %c0_54 = arith.constant 0 : index
    %98 = memref.load %arg5[%c4_53, %c0_54] : memref<8x2xf32, #tpu.memory_space<smem>>
    %99 = vector.broadcast %98 : f32 to vector<2x256xf32>
    %100 = arith.mulf %97, %99 : vector<2x256xf32>
    %101 = arith.addf %81, %100 : vector<2x256xf32>
    %c4_55 = arith.constant 4 : index
    %c1_56 = arith.constant 1 : index
    %102 = memref.load %arg5[%c4_55, %c1_56] : memref<8x2xf32, #tpu.memory_space<smem>>
    %103 = vector.broadcast %102 : f32 to vector<2x256xf32>
    %104 = arith.mulf %97, %103 : vector<2x256xf32>
    %105 = arith.addf %85, %104 : vector<2x256xf32>
    %c0_57 = arith.constant 0 : index
    %c5 = arith.constant 5 : index
    %106 = memref.load %arg3[%c0_57, %c5] : memref<2x8xf32, #tpu.memory_space<smem>>
    %107 = vector.broadcast %106 : f32 to vector<2x256xf32>
    %108 = arith.mulf %0, %107 : vector<2x256xf32>
    %c1_58 = arith.constant 1 : index
    %c5_59 = arith.constant 5 : index
    %109 = memref.load %arg3[%c1_58, %c5_59] : memref<2x8xf32, #tpu.memory_space<smem>>
    %110 = vector.broadcast %109 : f32 to vector<2x256xf32>
    %111 = arith.mulf %1, %110 : vector<2x256xf32>
    %112 = arith.addf %108, %111 : vector<2x256xf32>
    %c0_60 = arith.constant 0 : index
    %c5_61 = arith.constant 5 : index
    %113 = memref.load %arg4[%c0_60, %c5_61] : memref<1x8xf32, #tpu.memory_space<smem>>
    %114 = vector.broadcast %113 : f32 to vector<2x256xf32>
    %115 = arith.addf %112, %114 : vector<2x256xf32>
    %cst_62 = arith.constant 0.000000e+00 : f32
    %116 = vector.broadcast %cst_62 : f32 to vector<2x256xf32>
    %117 = arith.maximumf %115, %116 : vector<2x256xf32>
    %c5_63 = arith.constant 5 : index
    %c0_64 = arith.constant 0 : index
    %118 = memref.load %arg5[%c5_63, %c0_64] : memref<8x2xf32, #tpu.memory_space<smem>>
    %119 = vector.broadcast %118 : f32 to vector<2x256xf32>
    %120 = arith.mulf %117, %119 : vector<2x256xf32>
    %121 = arith.addf %101, %120 : vector<2x256xf32>
    %c5_65 = arith.constant 5 : index
    %c1_66 = arith.constant 1 : index
    %122 = memref.load %arg5[%c5_65, %c1_66] : memref<8x2xf32, #tpu.memory_space<smem>>
    %123 = vector.broadcast %122 : f32 to vector<2x256xf32>
    %124 = arith.mulf %117, %123 : vector<2x256xf32>
    %125 = arith.addf %105, %124 : vector<2x256xf32>
    %c0_67 = arith.constant 0 : index
    %c6 = arith.constant 6 : index
    %126 = memref.load %arg3[%c0_67, %c6] : memref<2x8xf32, #tpu.memory_space<smem>>
    %127 = vector.broadcast %126 : f32 to vector<2x256xf32>
    %128 = arith.mulf %0, %127 : vector<2x256xf32>
    %c1_68 = arith.constant 1 : index
    %c6_69 = arith.constant 6 : index
    %129 = memref.load %arg3[%c1_68, %c6_69] : memref<2x8xf32, #tpu.memory_space<smem>>
    %130 = vector.broadcast %129 : f32 to vector<2x256xf32>
    %131 = arith.mulf %1, %130 : vector<2x256xf32>
    %132 = arith.addf %128, %131 : vector<2x256xf32>
    %c0_70 = arith.constant 0 : index
    %c6_71 = arith.constant 6 : index
    %133 = memref.load %arg4[%c0_70, %c6_71] : memref<1x8xf32, #tpu.memory_space<smem>>
    %134 = vector.broadcast %133 : f32 to vector<2x256xf32>
    %135 = arith.addf %132, %134 : vector<2x256xf32>
    %cst_72 = arith.constant 0.000000e+00 : f32
    %136 = vector.broadcast %cst_72 : f32 to vector<2x256xf32>
    %137 = arith.maximumf %135, %136 : vector<2x256xf32>
    %c6_73 = arith.constant 6 : index
    %c0_74 = arith.constant 0 : index
    %138 = memref.load %arg5[%c6_73, %c0_74] : memref<8x2xf32, #tpu.memory_space<smem>>
    %139 = vector.broadcast %138 : f32 to vector<2x256xf32>
    %140 = arith.mulf %137, %139 : vector<2x256xf32>
    %141 = arith.addf %121, %140 : vector<2x256xf32>
    %c6_75 = arith.constant 6 : index
    %c1_76 = arith.constant 1 : index
    %142 = memref.load %arg5[%c6_75, %c1_76] : memref<8x2xf32, #tpu.memory_space<smem>>
    %143 = vector.broadcast %142 : f32 to vector<2x256xf32>
    %144 = arith.mulf %137, %143 : vector<2x256xf32>
    %145 = arith.addf %125, %144 : vector<2x256xf32>
    %c0_77 = arith.constant 0 : index
    %c7 = arith.constant 7 : index
    %146 = memref.load %arg3[%c0_77, %c7] : memref<2x8xf32, #tpu.memory_space<smem>>
    %147 = vector.broadcast %146 : f32 to vector<2x256xf32>
    %148 = arith.mulf %0, %147 : vector<2x256xf32>
    %c1_78 = arith.constant 1 : index
    %c7_79 = arith.constant 7 : index
    %149 = memref.load %arg3[%c1_78, %c7_79] : memref<2x8xf32, #tpu.memory_space<smem>>
    %150 = vector.broadcast %149 : f32 to vector<2x256xf32>
    %151 = arith.mulf %1, %150 : vector<2x256xf32>
    %152 = arith.addf %148, %151 : vector<2x256xf32>
    %c0_80 = arith.constant 0 : index
    %c7_81 = arith.constant 7 : index
    %153 = memref.load %arg4[%c0_80, %c7_81] : memref<1x8xf32, #tpu.memory_space<smem>>
    %154 = vector.broadcast %153 : f32 to vector<2x256xf32>
    %155 = arith.addf %152, %154 : vector<2x256xf32>
    %cst_82 = arith.constant 0.000000e+00 : f32
    %156 = vector.broadcast %cst_82 : f32 to vector<2x256xf32>
    %157 = arith.maximumf %155, %156 : vector<2x256xf32>
    %c7_83 = arith.constant 7 : index
    %c0_84 = arith.constant 0 : index
    %158 = memref.load %arg5[%c7_83, %c0_84] : memref<8x2xf32, #tpu.memory_space<smem>>
    %159 = vector.broadcast %158 : f32 to vector<2x256xf32>
    %160 = arith.mulf %157, %159 : vector<2x256xf32>
    %161 = arith.addf %141, %160 : vector<2x256xf32>
    %c7_85 = arith.constant 7 : index
    %c1_86 = arith.constant 1 : index
    %162 = memref.load %arg5[%c7_85, %c1_86] : memref<8x2xf32, #tpu.memory_space<smem>>
    %163 = vector.broadcast %162 : f32 to vector<2x256xf32>
    %164 = arith.mulf %157, %163 : vector<2x256xf32>
    %165 = arith.addf %145, %164 : vector<2x256xf32>
    %c0_87 = arith.constant 0 : index
    %c0_88 = arith.constant 0 : index
    %166 = vector.load %arg7[%c0_87, %c0_88] : memref<2x256xf32, #tpu.memory_space<vmem>>, vector<2x256xf32>
    tpu.vector_store %arg7[%c0_87, %c0_88], %161 {strides = array<i32>} : memref<2x256xf32, #tpu.memory_space<vmem>>, vector<2x256xf32>,
    %c0_89 = arith.constant 0 : index
    %c0_90 = arith.constant 0 : index
    %167 = vector.load %arg8[%c0_89, %c0_90] : memref<2x256xf32, #tpu.memory_space<vmem>>, vector<2x256xf32>
    tpu.vector_store %arg8[%c0_89, %c0_90], %165 {strides = array<i32>} : memref<2x256xf32, #tpu.memory_space<vmem>>, vector<2x256xf32>,
    return
  }
  func.func @transform_0(%arg0: i32) -> (i32, i32) {
    %c0_i32 = arith.constant 0 : i32
    %c0_i32_0 = arith.constant 0 : i32
    return %arg0, %c0_i32 : i32, i32
  }
  func.func @transform_1(%arg0: i32) -> (i32, i32) {
    %c0_i32 = arith.constant 0 : i32
    %c0_i32_0 = arith.constant 0 : i32
    return %arg0, %c0_i32 : i32, i32
  }
  func.func @transform_2(%arg0: i32) -> (i32, i32) {
    %c0_i32 = arith.constant 0 : i32
    %c0_i32_0 = arith.constant 0 : i32
    %c0_i32_1 = arith.constant 0 : i32
    return %c0_i32, %c0_i32_0 : i32, i32
  }
  func.func @transform_3(%arg0: i32) -> (i32, i32) {
    %c0_i32 = arith.constant 0 : i32
    %c0_i32_0 = arith.constant 0 : i32
    %c0_i32_1 = arith.constant 0 : i32
    return %c0_i32, %c0_i32_0 : i32, i32
  }
  func.func @transform_4(%arg0: i32) -> (i32, i32) {
    %c0_i32 = arith.constant 0 : i32
    %c0_i32_0 = arith.constant 0 : i32
    %c0_i32_1 = arith.constant 0 : i32
    return %c0_i32, %c0_i32_0 : i32, i32
  }
  func.func @transform_5(%arg0: i32) -> (i32, i32) {
    %c0_i32 = arith.constant 0 : i32
    %c0_i32_0 = arith.constant 0 : i32
    %c0_i32_1 = arith.constant 0 : i32
    return %c0_i32, %c0_i32_0 : i32, i32
  }
  func.func @transform_6(%arg0: i32) -> (i32, i32) {
    %c0_i32 = arith.constant 0 : i32
    %c0_i32_0 = arith.constant 0 : i32
    return %arg0, %c0_i32 : i32, i32
  }
  func.func @transform_7(%arg0: i32) -> (i32, i32) {
    %c0_i32 = arith.constant 0 : i32
    %c0_i32_0 = arith.constant 0 : i32
    return %arg0, %c0_i32 : i32, i32
  }
}

</mosaic_0001>

<bundles_post_ra>
// kernel: unrolled_block_forward.8
= control target key start
LH: loop header
LB: loop body
LE: loop exit
PB: predicated region body
PF: predicated region fallthrough
CT: control target
= control target key end

     0   :  { %s853_s21 = smov 0   ;;  %s855_s22 = smov 0   ;;  %s946_s0 = inlined_call_operand.vmem [shape: f32[2,256], index: 0, kind: input, shape index: {}]   ;;  %s947_s1 = inlined_call_operand.vmem [shape: f32[2,256], index: 1, kind: input, shape index: {}]   ;;  %s948_s2 = inlined_call_operand.vmem [shape: f32[4,256], index: 2, kind: input, shape index: {}]   ;;  %s949_s3 = inlined_call_operand.vmem [shape: f32[4,256], index: 3, kind: input, shape index: {}]   ;;  %s950_s4 = inlined_call_operand.vmem [shape: f32[1,256], index: 4, kind: input, shape index: {}]   ;;  %s951_s5 = inlined_call_operand.vmem [shape: f32[2,4,256], index: 5, kind: output, shape index: {0}]   ;;  %s952_s6 = inlined_call_operand.vmem [shape: f32[2,4,256], index: 6, kind: output, shape index: {1}]  }
   0x1   :  { %s857_s23 = smov 0   ;;  %s859_s24 = smov 0  }
   0x2   :  { %s861_s25 = smov 0  }
   0x3 LB: > { %s716_s26 = sadd.s32 4294967295, %s815_s25   ;;  %s26_s27 = sadd.s32 1, %s811_s24  ;;  %s815_s25 = sphi %s861_s25, %s17_s25   ;;  %s811_s24 = sphi %s859_s24, %s957_s24   ;;  %s807_s23 = sphi %s857_s23, %s956_s23   ;;  %s803_s22 = sphi %s855_s22, %s955_s22   ;;  %s799_s21 = sphi %s853_s21, %s954_s21  }
   0x4   : > { %p27_p0 = scmp.ge.s32.totalorder %s26_s27, 2  ;;  %s172_s28 = sadd.s32 1, %s803_s22 }
   0x5   : > { %p182_p1 = scmp.ne.s32.totalorder %s803_s22, %s799_s21  ;;  %p183_p2 = scmp.eq.s32.totalorder %s716_s26, 1 }
   0x6   : > { %s959_s27 = smov (%p27_p0, %s26_s27), 0  ;;  %p720_p4 = scmp.ge.s32.totalorder %s815_s25, 1 }
   0x7   : > { %p885_p3 = por %p183_p2, %p182_p1  ;;  %s168_s30 = ssub.s32 %s811_s24, %s959_s27 }
   0x8   : > { %p277_p5 = scmp.lt.s32.totalorder %s815_s25, 3  ;;  %p170_p6 = scmp.eq.s32.totalorder %s168_s30, 0 }
   0xa   : > { %p278_p7 = pnand %p720_p4, %p277_p5 }
   0xb   : > { %s894_s7 = scalar_select %p170_p6, %s803_s22, %s172_s28  }
   0xc   : > { %281 = sbr.rel (%p278_p7) target bundleno = 52 (0x34), region = 40  ;;  %p332_p8 = scmp.lt.s32.totalorder (!%p278_p7), %s807_s23, 1 }
   0xd   : > { %s323_s30 = sand.u32 (!%p278_p7), 1, %s799_s21  }
  0x11   : > { %v372_v0 = vlaneseq  ;;  %v817_v1 = vmov 1966171168   ;;  %s898_s8 = scalar_select %p332_p8, %s807_s23, 1 }
  0x12   : > { %v370_v2 = vunpack.c.l.s4 %v817_v1 }
  0x13   : > { %v373_v3 = vshrl.u32 %v372_v0, 7  ;;  %s723_s9 = sshll.u32 %s898_s8, 1  ;;  %s725_s10 = sshll.u32 %s898_s8, 2 }
  0x14   : > { %v371_v4 = vunpack.c.0.s8 %v370_v2  ;;  %s335_s13 = scalar_lea.vmem %s946_s0, %s723_s9  ;;  %s339_s16 = scalar_lea.vmem %s947_s1, %s723_s9 }
  0x15   : > { %v412_v6 = vsub.s32 0, %v373_v3  ;;  %s347_s19 = scalar_lea.vmem %s948_s2, %s725_s10  ;;  %s355_s28 = scalar_lea.vmem %s949_s3, %s725_s10  ;;  %v727_v7 = vld.sshfl [vmem:[%s335_s13] sm:$0x11 pattern:$0x75316420] }
  0x16   : > { %v374_v5 = vsub.s32 %v371_v4, %v373_v3  ;;  %v728_v9 = vld.sshfl [vmem:[%s339_s16] sm:$0x11 pattern:$0x75316420]  ;;  %v368_v10 = vcombine.high %v727_v7, %v727_v7  ;;  %s358_s12 = scalar_lea.vmem %s950_s4, %s898_s8  ;;  %s721_s10 = sshll.u32 %s323_s30, 3 }
  0x17   : > { %v407_v12 = vld [vmem:[%s347_s19] sm:$0xf]  ;;  %v392_v14 = vcombine.high %v728_v9, %v728_v9  ;;  %s325_s21 = scalar_lea.vmem [#allocation2], %s721_s10  ;;  %s331_s8 = scalar_lea.vmem [#allocation3], %s721_s10 }
  0x18   : > { %v375_v8 = vrot.slane %v727_v7, %v374_v5  ;;  %v399_v11 = vrot.slane %v728_v9, %v374_v5  ;;  %v408_v13 = vld [vmem:[%s355_s28] sm:$0xf]  ;;  %v382_v16 = vrot.slane %v368_v10, %v374_v5  ;;  %s732_s13 = sshll.u32 (%p885_p3), %s807_s23, 2 }
  0x19   : > { %v406_v18 = vrot.slane %v392_v14, %v374_v5  ;;  %v729_v25 = vld [vmem:[%s358_s12] ss:$0 sm:$0xff]  ;;  %s470_s16 = scalar_lea.vmem (%p885_p3), %s951_s5, %s732_s13 }
  0x1a   : > { %v413_v15 = vrot.slane %v375_v8, %v412_v6  ;;  %v425_v17 = vrot.slane %v399_v11, %v412_v6  ;;  %v417_v20 = vrot.slane %v382_v16, %v412_v6 }
  0x1b   : > { %v429_v23 = vrot.slane %v406_v18, %v412_v6 }
  0x1c   : > { %v420_v19 = vmul.f32 %v413_v15, %v407_v12  ;;  %v448_v21 = vmul.f32 %v413_v15, %v408_v13  ;;  %v432_v22 = vmul.f32 %v425_v17, %v408_v13  ;;  %v446_v24 = vmul.f32 %v425_v17, %v407_v12 }
  0x1d   : > { %v421_v26 = vmul.f32 %v417_v20, %v407_v12  ;;  %v449_v27 = vmul.f32 %v417_v20, %v408_v13  ;;  %v433_v29 = vmul.f32 %v429_v23, %v408_v13  ;;  %v447_v31 = vmul.f32 %v429_v23, %v407_v12 }
  0x1e   : > { %v434_v28 = vsub.f32 %v420_v19, %v432_v22  ;;  %v450_v30 = vadd.f32 %v448_v21, %v446_v24 }
  0x1f   : > { %v435_v33 = vsub.f32 %v421_v26, %v433_v29  ;;  %v451_v35 = vadd.f32 %v449_v27, %v447_v31  ;;  %466 = sbr.rel (!%p885_p3) target bundleno = 44 (0x2c), region = 44 }
  0x20   : > { %v442_v32 = vmul.f32 %v729_v25, %v434_v28  ;;  %v452_v34 = vmul.f32 %v729_v25, %v450_v30 }
  0x21   : > { %v443_v36 = vmul.f32 %v729_v25, %v435_v33  ;;  %v453_v37 = vmul.f32 %v729_v25, %v451_v35 }
  0x22   : > { %444 = vst [vmem:[%s325_s21] sm:$0xf] %v442_v32  ;;  %454 = vst [vmem:[%s331_s8] sm:$0xf] %v452_v34 }
  0x23   : > { %445 = vst [vmem:[%s325_s21 + $0x4] sm:$0xf] %v443_v36  ;;  %455 = vst [vmem:[%s331_s8 + $0x4] sm:$0xf] %v453_v37 }
  0x29   : > { %v487_v38 = vld [vmem:[%s325_s21] sm:$0xf] }
  0x2a   : > { %v489_v39 = vld [vmem:[%s325_s21 + $0x4] sm:$0xf]  ;;  %488 = vst [vmem:[%s470_s16] sm:$0xf] %v487_v38 }
  0x2b   : > { %490 = vst [vmem:[%s470_s16 + $0x8] sm:$0xf] %v489_v39 }
  0x2c PF: > { %518 = sbr.rel (!%p885_p3) target bundleno = 52 (0x34), region = 85  ;;  %s733_s17 = sshll.u32 (%p885_p3), %s807_s23, 2 }
  0x2d   : > { %s522_s20 = scalar_lea.vmem (%p885_p3), %s952_s6, %s733_s17 }
  0x31   : > { %v539_v40 = vld [vmem:[%s331_s8] sm:$0xf] }
  0x32   : > { %v541_v41 = vld [vmem:[%s331_s8 + $0x4] sm:$0xf]  ;;  %540 = vst [vmem:[%s522_s20] sm:$0xf] %v539_v40 }
  0x33   : > { %542 = vst [vmem:[%s522_s20 + $0x8] sm:$0xf] %v541_v41 }
  0x34 PF: > { %s17_s25 = sadd.s32 1, %s815_s25   ;;  %s954_s21 = smov %s803_s22 }
  0x35   : > { %p14_p9 = scmp.ge.s32.totalorder %s17_s25, 4   ;;  %s955_s22 = smov %s894_s7 }
  0x36   : > { %s956_s23 = smov %s811_s24  ;;  %s957_s24 = smov %s959_s27 }
  0x37   :  { %16 = sbr.rel (!%p14_p9) target bundleno = 3 (0x3), region = 176 }

// kernel: unrolled_block_forward.9
= control target key start
LH: loop header
LB: loop body
LE: loop exit
PB: predicated region body
PF: predicated region fallthrough
CT: control target
= control target key end

     0   :  { %v30_v0 = vlaneseq  ;;  %s163_s4 = inlined_call_operand.vmem [shape: f32[1,256], index: 4, kind: input, shape index: {}]   ;;  %s164_s5 = inlined_call_operand.vmem [shape: f32[1,256], index: 5, kind: input, shape index: {}]   ;;  %s165_s0 = inlined_call_operand.vmem [shape: f32[8,256], index: 0, kind: input, shape index: {}]   ;;  %s166_s2 = inlined_call_operand.vmem [shape: f32[8,256], index: 2, kind: input, shape index: {}]   ;;  %s167_s1 = inlined_call_operand.vmem [shape: f32[8,256], index: 1, kind: input, shape index: {}]   ;;  %s168_s3 = inlined_call_operand.vmem [shape: f32[8,256], index: 3, kind: input, shape index: {}]   ;;  %s169_s6 = inlined_call_operand.vmem [shape: f32[8,256], index: 6, kind: output, shape index: {0}]   ;;  %s170_s7 = inlined_call_operand.vmem [shape: f32[8,256], index: 7, kind: output, shape index: {1}]  }
   0x1   :  { %v25_v2 = vld [vmem:[%s163_s4] sm:$0x3]  ;;  %v28_v8 = vld [vmem:[%s165_s0 + $0x8] sm:$0xff] }
   0x2   :  { %v31_v1 = vshrl.u32 %v30_v0, 7  ;;  %v26_v3 = vld [vmem:[%s164_s5] sm:$0x3]  ;;  %v43_v9 = vld [vmem:[%s166_s2 + $0x8] sm:$0xff] }
   0x3   :  { %v27_v4 = vld [vmem:[%s165_s0] sm:$0xff]  ;;  %v62_v16 = vld [vmem:[%s167_s1 + $0x8] sm:$0xff] }
   0x4   :  { %v32_v5 = vsub.s32 0, %v31_v1  ;;  %v42_v6 = vld [vmem:[%s166_s2] sm:$0xff]  ;;  %v36_v7 = vsub.s32 1, %v31_v1  ;;  %v66_v17 = vld [vmem:[%s168_s3 + $0x8] sm:$0xff] }
   0x5   :  { %v61_v10 = vld [vmem:[%s167_s1] sm:$0xff] }
   0x6   :  { %v33_v11 = vrot.slane %v25_v2, %v32_v5  ;;  %v48_v12 = vrot.slane %v26_v3, %v32_v5  ;;  %v37_v13 = vrot.slane %v25_v2, %v36_v7  ;;  %v52_v14 = vrot.slane %v26_v3, %v36_v7  ;;  %v65_v15 = vld [vmem:[%s168_s3] sm:$0xff] }
   0x8   :  { %v40_v18 = vmul.f32 %v33_v11, %v27_v4  ;;  %v55_v19 = vmul.f32 %v48_v12, %v42_v6  ;;  %v41_v20 = vmul.f32 %v37_v13, %v28_v8  ;;  %v56_v21 = vmul.f32 %v52_v14, %v43_v9 }
   0x9   :  { %v63_v22 = vmul.f32 %v61_v10, %v33_v11  ;;  %v67_v23 = vmul.f32 %v65_v15, %v48_v12  ;;  %v64_v24 = vmul.f32 %v62_v16, %v37_v13  ;;  %v68_v25 = vmul.f32 %v66_v17, %v52_v14 }
   0xa   :  { %v57_v26 = vsub.f32 %v40_v18, %v55_v19  ;;  %v58_v27 = vsub.f32 %v41_v20, %v56_v21 }
   0xb   :  { %v69_v28 = vsub.f32 %v63_v22, %v67_v23  ;;  %v70_v29 = vsub.f32 %v64_v24, %v68_v25 }
   0xc   :  { %59 = vst [vmem:[%s169_s6] sm:$0xff] %v57_v26  ;;  %60 = vst [vmem:[%s169_s6 + $0x8] sm:$0xff] %v58_v27 }
   0xd   :  { %71 = vst [vmem:[%s170_s7] sm:$0xff] %v69_v28  ;;  %72 = vst [vmem:[%s170_s7 + $0x8] sm:$0xff] %v70_v29 }

// kernel: unrolled_block_forward.12
= control target key start
LH: loop header
LB: loop body
LE: loop exit
PB: predicated region body
PF: predicated region fallthrough
CT: control target
= control target key end

     0   :  { %v26_v0 = vlaneseq  ;;  %s162_s4 = inlined_call_operand.vmem [shape: f32[1,256], index: 4, kind: input, shape index: {}]   ;;  %s163_s0 = inlined_call_operand.vmem [shape: f32[8,256], index: 0, kind: input, shape index: {}]   ;;  %s164_s1 = inlined_call_operand.vmem [shape: f32[8,256], index: 1, kind: input, shape index: {}]   ;;  %s165_s2 = inlined_call_operand.vmem [shape: f32[8,256], index: 2, kind: input, shape index: {}]   ;;  %s166_s3 = inlined_call_operand.vmem [shape: f32[8,256], index: 3, kind: input, shape index: {}]   ;;  %s167_s5 = inlined_call_operand.vmem [shape: f32[1,128], index: 5, kind: output, shape index: {0}]   ;;  %s168_s6 = inlined_call_operand.vmem [shape: f32[1,128], index: 6, kind: output, shape index: {1}]  }
   0x1   :  { %v22_v2 = vld [vmem:[%s162_s4] sm:$0x3]  ;;  %v24_v6 = vld [vmem:[%s163_s0 + $0x8] sm:$0xff] }
   0x2   :  { %v27_v1 = vshrl.u32 %v26_v0, 7  ;;  %v23_v3 = vld [vmem:[%s163_s0] sm:$0xff]  ;;  %v39_v8 = vld [vmem:[%s164_s1 + $0x8] sm:$0xff] }
   0x3   :  { %v38_v7 = vld [vmem:[%s164_s1] sm:$0xff]  ;;  %v43_v12 = vld [vmem:[%s165_s2 + $0x8] sm:$0xff] }
   0x4   :  { %v28_v4 = vsub.s32 0, %v27_v1  ;;  %v32_v5 = vsub.s32 1, %v27_v1  ;;  %v42_v11 = vld [vmem:[%s165_s2] sm:$0xff]  ;;  %v47_v14 = vld [vmem:[%s166_s3 + $0x8] sm:$0xff] }
   0x5   :  { %v46_v13 = vld [vmem:[%s166_s3] sm:$0xff] }
   0x6   :  { %v29_v9 = vrot.slane %v22_v2, %v28_v4  ;;  %v33_v10 = vrot.slane %v22_v2, %v32_v5 }
   0x8   :  { %v36_v15 = vmul.f32 %v29_v9, %v23_v3  ;;  %v37_v16 = vmul.f32 %v33_v10, %v24_v6  ;;  %v40_v17 = vmul.f32 %v38_v7, %v29_v9  ;;  %v41_v18 = vmul.f32 %v39_v8, %v33_v10 }
   0xa   :  { %v44_v19 = vmul.f32 %v42_v11, %v36_v15  ;;  %v45_v20 = vmul.f32 %v43_v12, %v37_v16  ;;  %v48_v21 = vmul.f32 %v46_v13, %v40_v17  ;;  %v49_v22 = vmul.f32 %v47_v14, %v41_v18 }
   0xb   :  { %v62_v23 = vmul.f32 %v36_v15, %v36_v15  ;;  %v63_v24 = vmul.f32 %v37_v16, %v37_v16  ;;  %v64_v25 = vmul.f32 %v40_v17, %v40_v17  ;;  %v65_v26 = vmul.f32 %v41_v18, %v41_v18 }
   0xc   :  { %v50_v27 = vadd.f32 %v48_v21, %v44_v19  ;;  %v51_v28 = vadd.f32 %v49_v22, %v45_v20 }
   0xd   :  { %v66_v29 = vadd.f32 %v64_v25, %v62_v23  ;;  %v67_v30 = vadd.f32 %v65_v26, %v63_v24 }
   0xe   :  { %v52_v31 = vadd.f32 %v51_v28, %v50_v27 }
   0xf   :  { %v68_v32 = vadd.f32 %v67_v30, %v66_v29 }
  0x10   :  { %53 = vadd.xlane.f32.xlu0 %v52_v31 }
  0x14   :  { %69 = vadd.xlane.f32.xlu0 %v68_v32 }
  0x99   :  { %v54_v33 = vpop.xlane.xlu0 %53 }
  0x9a   :  { %v55_v34 = vrot.slane %v54_v33, 4 }
  0x9c   :  { %v56_v35 = vadd.f32 %v55_v34, %v54_v33 }
  0x9d   :  { %v70_v36 = vpop.xlane.xlu0 %69 }
  0x9e   :  { %v57_v37 = vrot.slane %v56_v35, 2  ;;  %v71_v38 = vrot.slane %v70_v36, 4 }
  0xa0   :  { %v72_v39 = vadd.f32 %v71_v38, %v70_v36  ;;  %v58_v40 = vadd.f32 %v57_v37, %v56_v35 }
  0xa2   :  { %v73_v41 = vrot.slane %v72_v39, 2  ;;  %v59_v42 = vrot.slane %v58_v40, 1 }
  0xa4   :  { %v74_v43 = vadd.f32 %v73_v41, %v72_v39  ;;  %v60_v44 = vadd.f32 %v59_v42, %v58_v40 }
  0xa6   :  { %90 = vpush %v60_v44  ;;  %v75_v45 = vrot.slane %v74_v43, 1 }
  0xa8   :  { %v76_v46 = vadd.f32 %v75_v45, %v74_v43 }
  0xaa   :  { %92 = vpush %v76_v46 }
  0xd7   :  { %s91_s1 = spop %90 }
  0xd8   :  { %v78_v47 = vstv %s91_s1 }
  0xd9   :  { %79 = vst [vmem:[%s167_s5] sm:$0x1] %v78_v47 }
  0xdb   :  { %s93_s13 = spop %92 }
  0xdc   :  { %v80_v48 = vstv %s93_s13 }
  0xdd   :  { %81 = vst [vmem:[%s168_s6] sm:$0x1] %v80_v48 }

// kernel: unrolled_block_forward.10
= control target key start
LH: loop header
LB: loop body
LE: loop exit
PB: predicated region body
PF: predicated region fallthrough
CT: control target
= control target key end

     0   :  { %s938_s24 = smov 0   ;;  %s940_s25 = smov 0   ;;  %s1056_s0 = inlined_call_operand.vmem [shape: f32[2,4,256], index: 0, kind: input, shape index: {}]   ;;  %s1057_s1 = inlined_call_operand.vmem [shape: f32[2,4,256], index: 1, kind: input, shape index: {}]   ;;  %s1058_s2 = inlined_call_operand.vmem [shape: f32[4,256], index: 2, kind: input, shape index: {}]   ;;  %s1059_s3 = inlined_call_operand.vmem [shape: f32[4,256], index: 3, kind: input, shape index: {}]   ;;  %s1060_s4 = inlined_call_operand.vmem [shape: f32[1,256], index: 4, kind: input, shape index: {}]   ;;  %s1061_s5 = inlined_call_operand.vmem [shape: f32[2,256], index: 5, kind: output, shape index: {0}]   ;;  %s1062_s6 = inlined_call_operand.vmem [shape: f32[2,256], index: 6, kind: output, shape index: {1}]   ;;  %s1063_s7 = inlined_call_operand.vmem [shape: f32[1,256], index: 7, kind: output, shape index: {2}]  }
   0x1   :  { %s942_s26 = smov 0   ;;  %s944_s27 = smov 0  }
   0x2   :  { %s946_s28 = smov 0  }
   0x3 LB: > { %s30_s29 = sadd.s32 1, %s891_s27  ;;  %p46_p1 = scmp.ne.s32.totalorder %s883_s25, %s879_s24  ;;  %s895_s28 = sphi %s946_s28, %s18_s28   ;;  %s891_s27 = sphi %s944_s27, %s1068_s27   ;;  %s887_s26 = sphi %s942_s26, %s1067_s26   ;;  %s883_s25 = sphi %s940_s25, %s1066_s25   ;;  %s879_s24 = sphi %s938_s24, %s1065_s24  }
   0x4   : > { %p32_p0 = scmp.ge.s32.totalorder %s30_s29, 2  ;;  %p47_p2 = scmp.eq.s32.totalorder %s895_s28, 0 }
   0x5   : > { %s39_s9 = sadd.s32 1, %s883_s25  ;;  %p799_p5 = scmp.ge.s32.totalorder %s895_s28, 2 }
   0x6   : > { %s1070_s29 = smov (%p32_p0, %s30_s29), 0  ;;  %p969_p3 = por %p47_p2, %p46_p1 }
   0x7   : > { %s35_s8 = ssub.s32 %s891_s27, %s1070_s29  ;;  %260 = sbr.rel (%p799_p5) target bundleno = 22 (0x16), region = 16 }
   0x8   : > { %p37_p4 = scmp.eq.s32.totalorder %s35_s8, 0 }
   0xa   : > { %s977_s10 = scalar_select %p37_p4, %s883_s25, %s39_s9  }
   0xc   : > { %263 = sbr.rel (!%p969_p3) target bundleno = 17 (0x11), region = 20  ;;  %s265_s11 = sand.u32 (%p969_p3), 1, %s883_s25  }
   0xd   : > { %s801_s12 = sshll.u32 (%p969_p3), %s891_s27, 2  ;;  %s800_s13 = sshll.u32 (%p969_p3), %s265_s11, 3 }
   0xe   : > { %s271_s16 = scalar_lea.vmem (%p969_p3), %s1056_s0, %s801_s12  ;;  %s267_s17 = scalar_lea.vmem (%p969_p3), [#allocation2], %s800_s13 }
   0xf   : > { %v288_v0 = vld [vmem:[%s271_s16] sm:$0xf] (%p969_p3)  ;;  %v290_v1 = vld [vmem:[%s271_s16 + $0x8] sm:$0xf] (%p969_p3) }
  0x10   : > { %289 = vst [vmem:[%s267_s17] sm:$0xf] (%p969_p3), %v288_v0  ;;  %291 = vst [vmem:[%s267_s17 + $0x4] sm:$0xf] (%p969_p3), %v290_v1 }
  0x11 PF: > { %319 = sbr.rel (!%p969_p3) target bundleno = 22 (0x16), region = 61  ;;  %s321_s18 = sand.u32 (%p969_p3), 1, %s883_s25  }
  0x12   : > { %s803_s19 = sshll.u32 (%p969_p3), %s891_s27, 2  ;;  %s802_s20 = sshll.u32 (%p969_p3), %s321_s18, 3 }
  0x13   : > { %s327_s23 = scalar_lea.vmem (%p969_p3), %s1057_s1, %s803_s19  ;;  %s323_s8 = scalar_lea.vmem (%p969_p3), [#allocation3], %s802_s20 }
  0x14   : > { %v344_v2 = vld [vmem:[%s327_s23] sm:$0xf] (%p969_p3)  ;;  %v346_v3 = vld [vmem:[%s327_s23 + $0x8] sm:$0xf] (%p969_p3) }
  0x15   : > { %345 = vst [vmem:[%s323_s8] sm:$0xf] (%p969_p3), %v344_v2  ;;  %347 = vst [vmem:[%s323_s8 + $0x4] sm:$0xf] (%p969_p3), %v346_v3 }
  0x16 PF: > { %p804_p6 = scmp.ge.s32.totalorder %s895_s28, 1  ;;  %p402_p7 = scmp.lt.s32.totalorder %s895_s28, 3 }
  0x18   : > { %p403_p8 = pnand %p804_p6, %p402_p7 }
  0x19   : > { %s409_s30 = sand.u32 (!%p403_p8), 1, %s879_s24   ;;  %p478_p9 = scmp.lt.s32.totalorder (!%p403_p8), %s887_s26, 1 }
  0x1a   : > { %406 = sbr.rel (%p403_p8) target bundleno = 274 (0x112), region = 114  ;;  %s805_s9 = sshll.u32 (!%p403_p8), %s409_s30, 3 }
  0x1b   : > { %s411_s11 = scalar_lea.vmem (!%p403_p8), [#allocation2], %s805_s9  ;;  %s418_s13 = scalar_lea.vmem (!%p403_p8), [#allocation3], %s805_s9 }
  0x1f   : > { %s1072_s26 = smov (!%p478_p9, %s887_s26), 1  ;;  %v514_v4 = vld [vmem:[%s411_s11] sm:$0xf]  ;;  %v515_v5 = vld [vmem:[%s411_s11 + $0x4] sm:$0xf]  ;;  %vm525_vm0 = vcmask 1043456  }
  0x20   : > { %s807_s12 = sshll.u32 %s1072_s26, 2  ;;  %v516_v6 = vld [vmem:[%s418_s13] sm:$0xf]  ;;  %v517_v7 = vld [vmem:[%s418_s13 + $0x4] sm:$0xf]  ;;  %s809_s19 = sshll.u32 %s1072_s26, 1 }
  0x21   : > { %s483_s16 = scalar_lea.vmem %s1058_s2, %s807_s12  ;;  %s491_s24 = scalar_lea.vmem %s1059_s3, %s807_s12  ;;  %v897_v14 = vmov 0.0   ;;  %vm542_vm1 = vcmask 1041409   ;;  %vm593_vm2 = vcmask 1041408  }
  0x22   : > { %v512_v8 = vld [vmem:[%s483_s16] sm:$0xf]  ;;  %s1012_s22 = scalar_lea.vmem %s1061_s5, %s809_s19  ;;  %s1017_s30 = scalar_lea.vmem %s1062_s6, %s809_s19 }
  0x23   : > { %v513_v9 = vld [vmem:[%s491_s24] sm:$0xf]  ;;  %v519_v10 = vmul.f32 %v514_v4, %v512_v8  ;;  %v520_v11 = vmul.f32 %v515_v5, %v512_v8  ;;  %510 = vst [vmem:[%s1012_s22] sm:$0x3] %v897_v14  ;;  %511 = vst [vmem:[%s1017_s30] sm:$0x3] %v897_v14  ;;  %v548_v15 = vmul.f32 %v516_v6, %v512_v8  ;;  %s494_s12 = scalar_lea.vmem %s1060_s4, %s1072_s26  ;;  %s505_s15 = scalar_lea.vmem %s1063_s7, %s1072_s26 }
  0x24   : > { %v521_v12 = vmul.f32 %v516_v6, %v513_v9  ;;  %v522_v13 = vmul.f32 %v517_v7, %v513_v9  ;;  %v549_v16 = vmul.f32 %v517_v7, %v512_v8  ;;  %v550_v17 = vmul.f32 %v514_v4, %v513_v9  ;;  %v811_v57 = vld [vmem:[%s494_s12] ss:$0 sm:$0xff] }
  0x25   : > { %v551_v18 = vmul.f32 %v515_v5, %v513_v9 }
  0x26   : > { %v523_v19 = vadd.f32 %v521_v12, %v519_v10  ;;  %v524_v20 = vadd.f32 %v522_v13, %v520_v11  ;;  %v552_v21 = vsub.f32 %v548_v15, %v550_v17 }
  0x27   : > { %v553_v22 = vsub.f32 %v549_v16, %v551_v18 }
  0x28   : > { %v526_v23 = vsel %vm525_vm0, %v523_v19, 0.0  ;;  %v533_v24 = vsel %vm525_vm0, %v524_v20, 0.0  ;;  %v554_v27 = vsel %vm525_vm0, %v552_v21, 0.0 }
  0x29   : > { %v527_v25 = vrot.slane %v526_v23, 4  ;;  %v534_v26 = vrot.slane %v533_v24, 4  ;;  %v561_v28 = vsel %vm525_vm0, %v553_v22, 0.0  ;;  %v555_v29 = vrot.slane %v554_v27, 4 }
  0x2a   : > { %v562_v30 = vrot.slane %v561_v28, 4  ;;  %v518_v47 = vld [vmem:[%s1012_s22] sm:$0x3] }
  0x2b   : > { %v528_v31 = vadd.f32 %v527_v25, %v526_v23  ;;  %v535_v32 = vadd.f32 %v534_v26, %v533_v24  ;;  %v556_v33 = vadd.f32 %v555_v29, %v554_v27  ;;  %v547_v50 = vld [vmem:[%s1017_s30] sm:$0x3] }
  0x2c   : > { %v563_v34 = vadd.f32 %v562_v30, %v561_v28 }
  0x2d   : > { %v529_v35 = vrot.slane %v528_v31, 2  ;;  %v536_v36 = vrot.slane %v535_v32, 2  ;;  %v557_v37 = vrot.slane %v556_v33, 2 }
  0x2e   : > { %v564_v38 = vrot.slane %v563_v34, 2 }
  0x2f   : > { %v530_v39 = vadd.f32 %v529_v35, %v528_v31  ;;  %v537_v40 = vadd.f32 %v536_v36, %v535_v32  ;;  %v558_v41 = vadd.f32 %v557_v37, %v556_v33 }
  0x30   : > { %v565_v42 = vadd.f32 %v564_v38, %v563_v34 }
  0x31   : > { %v531_v43 = vrot.slane %v530_v39, 1  ;;  %v538_v44 = vrot.slane %v537_v40, 1  ;;  %v559_v45 = vrot.slane %v558_v41, 1 }
  0x32   : > { %v566_v46 = vrot.slane %v565_v42, 1 }
  0x33   : > { %v532_v48 = vadd.f32 %v531_v43, %v530_v39  ;;  %v539_v49 = vadd.f32 %v538_v44, %v537_v40  ;;  %v560_v51 = vadd.f32 %v559_v45, %v558_v41 }
  0x34   : > { %v567_v52 = vadd.f32 %v566_v46, %v565_v42 }
  0x35   : > { %v543_v53 = vsel %vm542_vm1, %v539_v49, %v532_v48 }
  0x36   : > { %v545_v54 = vadd.f32 %v543_v53, %v518_v47  ;;  %v570_v55 = vsel %vm542_vm1, %v567_v52, %v560_v51 }
  0x37   : > { %v572_v56 = vadd.f32 %v570_v55, %v547_v50 }
  0x38   : > { %546 = vst [vmem:[%s1012_s22] sm:$0x3] %v545_v54 }
  0x39   : > { %573 = vst [vmem:[%s1017_s30] sm:$0x3] %v572_v56 }
  0x3f   : > { %v578_v58 = vld [vmem:[%s1012_s22] sm:$0x3] }
  0x40   : > { %v585_v59 = vmul.f32 %v811_v57, %v578_v58  ;;  %v586_v60 = vld [vmem:[%s1017_s30] sm:$0x3] }
  0x41   : > { %v587_v61 = vmul.f32 %v811_v57, %v586_v60 }
  0x42   : > { %588 = vst [vmem:[%s1012_s22] sm:$0x3] %v585_v59  ;;  %v590_v62 = vmul.f32 %v585_v59, %v585_v59 }
  0x43   : > { %589 = vst [vmem:[%s1017_s30] sm:$0x3] %v587_v61  ;;  %v591_v63 = vmul.f32 %v587_v61, %v587_v61 }
  0x45   : > { %v592_v0 = vadd.f32 %v591_v63, %v590_v62 }
  0x47   : > { %v594_v1 = vsel %vm593_vm2, %v592_v0, 0.0 }
  0x48   : > { %595 = vadd.xlane.f32.xlu0 %v594_v1 }
  0xd1   : > { %v596_v2 = vpop.xlane.xlu0 %595 }
  0xd2   : > { %v597_v3 = vrot.slane %v596_v2, 4 }
  0xd4   : > { %v598_v4 = vadd.f32 %v597_v3, %v596_v2 }
  0xd6   : > { %v599_v5 = vrot.slane %v598_v4, 2 }
  0xd8   : > { %v600_v6 = vadd.f32 %v599_v5, %v598_v4 }
  0xda   : > { %v601_v7 = vrot.slane %v600_v6, 1 }
  0xdc   : > { %v602_v8 = vadd.f32 %v601_v7, %v600_v6 }
  0xde   : > { %814 = vpush %v602_v8 }
 0x10f   : > { %s815_s16 = spop %814 }
 0x110   : > { %v604_v9 = vstv %s815_s16 }
 0x111   : > { %605 = vst [vmem:[%s505_s15] sm:$0x1] %v604_v9 }
 0x112 PF: > { %s18_s28 = sadd.s32 1, %s895_s28   ;;  %s1065_s24 = smov %s883_s25 }
 0x113   : > { %p15_p10 = scmp.ge.s32.totalorder %s18_s28, 4   ;;  %s1066_s25 = smov %s977_s10 }
 0x114   : > { %s1067_s26 = smov %s891_s27  ;;  %s1068_s27 = smov %s1070_s29 }
 0x115   :  { %17 = sbr.rel (!%p15_p10) target bundleno = 3 (0x3), region = 206 }

// kernel: unrolled_block_forward.13
= control target key start
LH: loop header
LB: loop body
LE: loop exit
PB: predicated region body
PF: predicated region fallthrough
CT: control target
= control target key end

     0   :  { %v41_v0 = vlaneseq  ;;  %s217_s0 = inlined_call_operand.<no memory space> [shape: f32[1,1], index: 0, kind: input, shape index: {}]   ;;  %s218_s1 = inlined_call_operand.vmem [shape: f32[8,256], index: 1, kind: input, shape index: {}]   ;;  %s219_s3 = inlined_call_operand.vmem [shape: f32[8,256], index: 3, kind: input, shape index: {}]   ;;  %s220_s7 = inlined_call_operand.vmem [shape: f32[1,256], index: 7, kind: input, shape index: {}]   ;;  %s221_s8 = inlined_call_operand.vmem [shape: f32[1,256], index: 8, kind: input, shape index: {}]   ;;  %s222_s5 = inlined_call_operand.vmem [shape: f32[8,256], index: 5, kind: input, shape index: {}]   ;;  %s223_s2 = inlined_call_operand.vmem [shape: f32[8,256], index: 2, kind: input, shape index: {}]   ;;  %s224_s4 = inlined_call_operand.vmem [shape: f32[8,256], index: 4, kind: input, shape index: {}]   ;;  %s225_s6 = inlined_call_operand.vmem [shape: f32[8,256], index: 6, kind: input, shape index: {}]   ;;  %s226_s9 = inlined_call_operand.vmem [shape: f32[8,256], index: 9, kind: output, shape index: {0}]   ;;  %s227_s10 = inlined_call_operand.vmem [shape: f32[8,256], index: 10, kind: output, shape index: {1}]  }
   0x1   :  { %v57_v1 = vstv %s217_s0  ;;  %v36_v2 = vld [vmem:[%s220_s7] sm:$0x3]  ;;  %v54_v8 = vld [vmem:[%s218_s1 + $0x8] sm:$0xff] }
   0x2   :  { %v42_v3 = vshrl.u32 %v41_v0, 7  ;;  %v53_v4 = vld [vmem:[%s218_s1] sm:$0xff]  ;;  %v56_v9 = vld [vmem:[%s219_s3 + $0x8] sm:$0xff] }
   0x3   :  { %v55_v5 = vld [vmem:[%s219_s3] sm:$0xff]  ;;  %v59_v13 = vmul.f32 %v57_v1, %v56_v9  ;;  %v39_v17 = vld [vmem:[%s222_s5 + $0x8] sm:$0xff] }
   0x4   :  { %v37_v6 = vld [vmem:[%s221_s8] sm:$0x3]  ;;  %v58_v7 = vmul.f32 %v57_v1, %v55_v5  ;;  %v43_v11 = vsub.s32 0, %v42_v3  ;;  %v47_v12 = vsub.s32 1, %v42_v3  ;;  %v86_v20 = vld [vmem:[%s224_s4 + $0x8] sm:$0xff] }
   0x5   :  { %v38_v10 = vld [vmem:[%s222_s5] sm:$0xff]  ;;  %v61_v24 = vsub.f32 %v54_v8, %v59_v13  ;;  %v80_v25 = vld [vmem:[%s225_s6 + $0x8] sm:$0xff]  ;;  %v88_v29 = vmul.f32 %v86_v20, %v57_v1 }
   0x6   :  { %v83_v14 = vld [vmem:[%s223_s2] sm:$0xff]  ;;  %v60_v16 = vsub.f32 %v53_v4, %v58_v7  ;;  %v44_v21 = vrot.slane %v36_v2, %v43_v11  ;;  %v66_v22 = vrot.slane %v37_v6, %v43_v11  ;;  %v48_v23 = vrot.slane %v36_v2, %v47_v12  ;;  %v84_v26 = vld [vmem:[%s223_s2 + $0x8] sm:$0xff] }
   0x7   :  { %v85_v15 = vld [vmem:[%s224_s4] sm:$0xff]  ;;  %v70_v27 = vrot.slane %v37_v6, %v47_v12  ;;  %v90_v37 = vsub.f32 %v84_v26, %v88_v29 }
   0x8   :  { %v79_v18 = vld [vmem:[%s225_s6] sm:$0xff]  ;;  %v87_v19 = vmul.f32 %v85_v15, %v57_v1  ;;  %v51_v30 = vmul.f32 %v44_v21, %v38_v10  ;;  %v73_v31 = vmul.f32 %v66_v22, %v60_v16  ;;  %v52_v32 = vmul.f32 %v48_v23, %v39_v17 }
   0x9   :  { %v81_v33 = vmul.f32 %v79_v18, %v44_v21  ;;  %v74_v34 = vmul.f32 %v70_v27, %v61_v24  ;;  %v82_v36 = vmul.f32 %v80_v25, %v48_v23  ;;  %v92_v41 = vmul.f32 %v90_v37, %v70_v27 }
   0xa   :  { %v89_v28 = vsub.f32 %v83_v14, %v87_v19  ;;  %v75_v38 = vadd.f32 %v73_v31, %v51_v30 }
   0xb   :  { %v76_v39 = vadd.f32 %v74_v34, %v52_v32  ;;  %v94_v42 = vadd.f32 %v92_v41, %v82_v36 }
   0xc   :  { %v91_v35 = vmul.f32 %v89_v28, %v66_v22  ;;  %77 = vst [vmem:[%s226_s9] sm:$0xff] %v75_v38 }
   0xd   :  { %78 = vst [vmem:[%s226_s9 + $0x8] sm:$0xff] %v76_v39  ;;  %96 = vst [vmem:[%s227_s10 + $0x8] sm:$0xff] %v94_v42 }
   0xe   :  { %v93_v40 = vadd.f32 %v91_v35, %v81_v33 }
  0x10   :  { %95 = vst [vmem:[%s227_s10] sm:$0xff] %v93_v40 }

// kernel: unrolled_block_forward.14
= control target key start
LH: loop header
LB: loop body
LE: loop exit
PB: predicated region body
PF: predicated region fallthrough
CT: control target
= control target key end

     0   :  { %s1183_s0 = inlined_call_operand.vmem [shape: f32[2,4,256], index: 0, kind: input, shape index: {}]   ;;  %s1184_s1 = inlined_call_operand.vmem [shape: f32[2,4,256], index: 1, kind: input, shape index: {}]   ;;  %s1185_s2 = inlined_call_operand.vmem [shape: f32[4,256], index: 2, kind: input, shape index: {}]   ;;  %s1186_s3 = inlined_call_operand.vmem [shape: f32[4,256], index: 3, kind: input, shape index: {}]   ;;  %s1187_s4 = inlined_call_operand.vmem [shape: f32[1,256], index: 4, kind: input, shape index: {}]   ;;  %s1188_s5 = inlined_call_operand.vmem [shape: f32[2,256], index: 5, kind: output, shape index: {0}]   ;;  %s1189_s6 = inlined_call_operand.vmem [shape: f32[2,256], index: 6, kind: output, shape index: {1}]   ;;  %s1190_s7 = inlined_call_operand.hbm [shape: f32[1,256], index: 7, kind: output, shape index: {2}]  }
   0x1   :  { %1193 = sst [smem:[#allocation8_spill]] %s1183_s0 }
   0x2   :  { %1194 = sst [smem:[#allocation9_spill]] %s1184_s1 }
   0x3   :  { %13 = vsyncpa [#allocation5], 0 }
   0x4   :  { %15 = vsyncpa [#allocation5 + $0x1], 0  ;;  %s1015_s24 = smov 0   ;;  %s1017_s25 = smov 0  }
   0x5   :  { %s1019_s26 = smov 0   ;;  %s1021_s27 = smov 0  }
   0x6   :  { %s1023_s28 = smov 0   ;;  %s1025_s29 = smov 0  }
   0x7 LB: > { %s818_s30 = sadd.s32 4294967295, %s971_s29   ;;  %s819_s8 = sadd.s32 4294967294, %s971_s29   ;;  %s971_s29 = sphi %s1025_s29, %s21_s29   ;;  %s967_s28 = sphi %s1023_s28, %s1207_s28   ;;  %s963_s27 = sphi %s1021_s27, %s1206_s27   ;;  %s959_s26 = sphi %s1019_s26, %s1205_s26   ;;  %s955_s25 = sphi %s1017_s25, %s1204_s25   ;;  %s951_s24 = sphi %s1015_s24, %s1203_s24  }
   0x8   : > { %s33_s9 = sadd.s32 1, %s967_s28  ;;  %s42_s10 = sadd.s32 1, %s959_s26 }
   0x9   : > { %p35_p0 = scmp.ge.s32.totalorder %s33_s9, 2  ;;  %p49_p1 = scmp.ne.s32.totalorder %s959_s26, %s955_s25 }
   0xa   : > { %p50_p2 = scmp.eq.s32.totalorder %s971_s29, 0  ;;  %p241_p3 = scmp.eq.s32.totalorder %s818_s30, 1 }
   0xb   : > { %s1209_s9 = smov (%p35_p0, %s33_s9), 0  ;;  %p246_p6 = scmp.ne.s32.totalorder %s955_s25, %s951_s24 }
   0xc   : > { %1195 = sst [smem:[#allocation7_spill]] %s1209_s9  ;;  %p1054_p4 = por %p50_p2, %p49_p1 }
   0xd   : > { %p1058_p5 = por %p241_p3, %p49_p1  ;;  %s38_s13 = ssub.s32 %s967_s28, %s1209_s9 }
   0xe   : > { %p40_p7 = scmp.eq.s32.totalorder %s38_s13, 0  ;;  %p247_p8 = scmp.eq.s32.totalorder %s819_s8, 1 }
   0xf   : > { %p1192_p10 = scmp.ge.s32.totalorder %s971_s29, 2 }
  0x10   : > { %s1067_s14 = scalar_select %p40_p7, %s959_s26, %s42_s10  }
  0x11   : > { %p1069_p9 = por %p247_p8, %p246_p6  ;;  %263 = sbr.rel (%p1192_p10) target bundleno = 44 (0x2c), region = 16 }
  0x16   : > { %266 = sbr.rel (!%p1054_p4) target bundleno = 33 (0x21), region = 20  ;;  %s268_s16 = sand.u32 (%p1054_p4), 1, %s959_s26  }
  0x17   : > { %s823_s17 = sshll.u32 (%p1054_p4), %s967_s28, 2  ;;  %s822_s18 = sshll.u32 (%p1054_p4), %s268_s16, 3 }
  0x18   : > { %s1199_s0 = sld [smem:[#allocation8_spill]] (%p1054_p4)  ;;  %s270_s22 = scalar_lea.vmem (%p1054_p4), [#allocation2], %s822_s18 }
  0x1e   : > { %s274_s21 = scalar_lea.vmem %s1199_s0, %s823_s17 }
  0x1f   : > { %v291_v0 = vld [vmem:[%s274_s21] sm:$0xf]  ;;  %v293_v1 = vld [vmem:[%s274_s21 + $0x8] sm:$0xf] }
  0x20   : > { %292 = vst [vmem:[%s270_s22] sm:$0xf] %v291_v0  ;;  %294 = vst [vmem:[%s270_s22 + $0x4] sm:$0xf] %v293_v1 }
  0x21 PF: > { %322 = sbr.rel (!%p1054_p4) target bundleno = 44 (0x2c), region = 61  ;;  %s324_s23 = sand.u32 (%p1054_p4), 1, %s959_s26  }
  0x22   : > { %s825_s30 = sshll.u32 (%p1054_p4), %s967_s28, 2  ;;  %s824_s8 = sshll.u32 (%p1054_p4), %s324_s23, 3 }
  0x23   : > { %s1200_s1 = sld [smem:[#allocation9_spill]] (%p1054_p4)  ;;  %s326_s17 = scalar_lea.vmem (%p1054_p4), [#allocation3], %s824_s8 }
  0x29   : > { %s330_s16 = scalar_lea.vmem %s1200_s1, %s825_s30 }
  0x2a   : > { %v347_v2 = vld [vmem:[%s330_s16] sm:$0xf]  ;;  %v349_v3 = vld [vmem:[%s330_s16 + $0x8] sm:$0xf] }
  0x2b   : > { %348 = vst [vmem:[%s326_s17] sm:$0xf] %v347_v2  ;;  %350 = vst [vmem:[%s326_s17 + $0x4] sm:$0xf] %v349_v3 }
  0x2c PF: > { %p826_p11 = scmp.ge.s32.totalorder %s971_s29, 1  ;;  %p405_p12 = scmp.lt.s32.totalorder %s971_s29, 3 }
  0x2e   : > { %p406_p13 = pnand %p826_p11, %p405_p12 }
  0x2f   : > { %s1093_s11 = sand.u32 (!%p406_p13), 1, %s955_s25   ;;  %p482_p0 = scmp.lt.s32.totalorder (!%p406_p13), %s963_s27, 1 }
  0x30   : > { %409 = sbr.rel (%p406_p13) target bundleno = 309 (0x135), region = 114  ;;  %s827_s18 = sshll.u32 (!%p406_p13), %s1093_s11, 3 }
  0x31   : > { %s414_s20 = scalar_lea.vmem (!%p406_p13), [#allocation2], %s827_s18  ;;  %s421_s22 = scalar_lea.vmem (!%p406_p13), [#allocation3], %s827_s18 }
  0x32   : > { %s834_s23 = sshll.u32 (!%p406_p13), %s963_s27, 4 }
  0x33   : > { %s632_s13 = scalar_lea.hbm (!%p406_p13), %s1190_s7, %s834_s23 }
  0x35   : > { %s1098_s19 = scalar_select %p482_p0, %s963_s27, 1  ;;  %v515_v4 = vld [vmem:[%s414_s20] sm:$0xf]  ;;  %v516_v5 = vld [vmem:[%s414_s20 + $0x4] sm:$0xf]  ;;  %vm526_vm0 = vcmask 1043456  }
  0x36   : > { %v517_v6 = vld [vmem:[%s421_s22] sm:$0xf]  ;;  %v518_v7 = vld [vmem:[%s421_s22 + $0x4] sm:$0xf]  ;;  %v973_v14 = vmov 0.0   ;;  %vm543_vm1 = vcmask 1041409  }
  0x37   : > { %s829_s21 = sshll.u32 %s1098_s19, 2  ;;  %s831_s17 = sshll.u32 %s1098_s19, 1  ;;  %vm594_vm2 = vcmask 1041408  }
  0x38   : > { %s487_s8 = scalar_lea.vmem %s1185_s2, %s829_s21  ;;  %s495_s16 = scalar_lea.vmem %s1186_s3, %s829_s21 }
  0x39   : > { %v513_v8 = vld [vmem:[%s487_s8] sm:$0xf]  ;;  %s1111_s20 = scalar_lea.vmem %s1188_s5, %s831_s17  ;;  %s1116_s22 = scalar_lea.vmem %s1189_s6, %s831_s17 }
  0x3a   : > { %v514_v9 = vld [vmem:[%s495_s16] sm:$0xf]  ;;  %v520_v10 = vmul.f32 %v515_v4, %v513_v8  ;;  %v521_v11 = vmul.f32 %v516_v5, %v513_v8  ;;  %511 = vst [vmem:[%s1111_s20] sm:$0x3] %v973_v14  ;;  %512 = vst [vmem:[%s1116_s22] sm:$0x3] %v973_v14  ;;  %v549_v15 = vmul.f32 %v517_v6, %v513_v8  ;;  %s498_s9 = scalar_lea.vmem %s1187_s4, %s1098_s19  ;;  %s479_s19 = scalar_lea.vmem [#allocation4], %s1093_s11 }
  0x3b   : > { %v522_v12 = vmul.f32 %v517_v6, %v514_v9  ;;  %v523_v13 = vmul.f32 %v518_v7, %v514_v9  ;;  %v550_v16 = vmul.f32 %v518_v7, %v513_v8  ;;  %v551_v17 = vmul.f32 %v515_v4, %v514_v9  ;;  %v833_v57 = vld [vmem:[%s498_s9] ss:$0 sm:$0xff]  ;;  %s634_s21 = sshll.u32 %s479_s19, 4  ;;  %s616_s16 = scalar_lea.sflag [#allocation5], %s1093_s11  ;;  %s1138_s21 = int_to_ptr.vmem [resolvable:$true] %s634_s21 }
  0x3c   : > { %v552_v18 = vmul.f32 %v516_v5, %v514_v9  ;;  %s895_s17 = scalar_lea.vmem %s1138_s21, 16 }
  0x3d   : > { %v524_v19 = vadd.f32 %v522_v12, %v520_v10  ;;  %v525_v20 = vadd.f32 %v523_v13, %v521_v11  ;;  %v553_v21 = vsub.f32 %v549_v15, %v551_v17  ;;  %p896_p1 = scmp.ne.s32.totalorder %s1138_s21, %s895_s17 }
  0x3e   : > { %v554_v22 = vsub.f32 %v550_v16, %v552_v18 }
  0x3f   : > { %v527_v23 = vsel %vm526_vm0, %v524_v19, 0.0  ;;  %v534_v24 = vsel %vm526_vm0, %v525_v20, 0.0  ;;  %v555_v27 = vsel %vm526_vm0, %v553_v21, 0.0  ;;  %p897_p2 = pnand %p896_p1, %p1058_p5 }
  0x40   : > { %v528_v25 = vrot.slane %v527_v23, 4  ;;  %v535_v26 = vrot.slane %v534_v24, 4  ;;  %v562_v28 = vsel %vm526_vm0, %v554_v22, 0.0  ;;  %v556_v29 = vrot.slane %v555_v27, 4 }
  0x41   : > { %v563_v30 = vrot.slane %v562_v28, 4  ;;  %v519_v47 = vld [vmem:[%s1111_s20] sm:$0x3]  ;;  %p898_p3 = pneg %p897_p2 }
  0x42   : > { %v529_v31 = vadd.f32 %v528_v25, %v527_v23  ;;  %v536_v32 = vadd.f32 %v535_v26, %v534_v24  ;;  %v557_v33 = vadd.f32 %v556_v29, %v555_v27  ;;  %v548_v50 = vld [vmem:[%s1116_s22] sm:$0x3] }
  0x43   : > { %v564_v34 = vadd.f32 %v563_v30, %v562_v28 }
  0x44   : > { %v530_v35 = vrot.slane %v529_v31, 2  ;;  %v537_v36 = vrot.slane %v536_v32, 2  ;;  %v558_v37 = vrot.slane %v557_v33, 2 }
  0x45   : > { %v565_v38 = vrot.slane %v564_v34, 2 }
  0x46   : > { %v531_v39 = vadd.f32 %v530_v35, %v529_v31  ;;  %v538_v40 = vadd.f32 %v537_v36, %v536_v32  ;;  %v559_v41 = vadd.f32 %v558_v37, %v557_v33 }
  0x47   : > { %v566_v42 = vadd.f32 %v565_v38, %v564_v34 }
  0x48   : > { %v532_v43 = vrot.slane %v531_v39, 1  ;;  %v539_v44 = vrot.slane %v538_v40, 1  ;;  %v560_v45 = vrot.slane %v559_v41, 1 }
  0x49   : > { %v567_v46 = vrot.slane %v566_v42, 1 }
  0x4a   : > { %v533_v48 = vadd.f32 %v532_v43, %v531_v39  ;;  %v540_v49 = vadd.f32 %v539_v44, %v538_v40  ;;  %v561_v51 = vadd.f32 %v560_v45, %v559_v41 }
  0x4b   : > { %v568_v52 = vadd.f32 %v567_v46, %v566_v42 }
  0x4c   : > { %v544_v53 = vsel %vm543_vm1, %v540_v49, %v533_v48 }
  0x4d   : > { %v546_v54 = vadd.f32 %v544_v53, %v519_v47  ;;  %v571_v55 = vsel %vm543_vm1, %v568_v52, %v561_v51 }
  0x4e   : > { %v573_v56 = vadd.f32 %v571_v55, %v548_v50 }
  0x4f   : > { %547 = vst [vmem:[%s1111_s20] sm:$0x3] %v546_v54 }
  0x50   : > { %574 = vst [vmem:[%s1116_s22] sm:$0x3] %v573_v56 }
  0x56   : > { %v579_v58 = vld [vmem:[%s1111_s20] sm:$0x3] }
  0x57   : > { %v586_v59 = vmul.f32 %v833_v57, %v579_v58  ;;  %v587_v60 = vld [vmem:[%s1116_s22] sm:$0x3] }
  0x58   : > { %v588_v61 = vmul.f32 %v833_v57, %v587_v60 }
  0x59   : > { %589 = vst [vmem:[%s1111_s20] sm:$0x3] %v586_v59  ;;  %v591_v62 = vmul.f32 %v586_v59, %v586_v59  ;;  %s974_s20 = smov [#allocation4]  }
  0x5a   : > { %590 = vst [vmem:[%s1116_s22] sm:$0x3] %v588_v61  ;;  %v592_v63 = vmul.f32 %v588_v61, %v588_v61  ;;  %s899_s27 = sshll.u32 %s974_s20, 4  ;;  %s900_s27 = int_to_ptr.vmem [resolvable:$false] %s899_s27 }
  0x5b   : > { %s901_s18 = scalar_lea.vmem %s900_s27, 32  ;;  %p902_p4 = scmp.lt.s32.totalorder %s1138_s21, %s900_s27 }
  0x5c   : > { %v593_v0 = vadd.f32 %v592_v63, %v591_v62  ;;  %p903_p6 = scmp.lt.s32.totalorder %s901_s18, %s895_s17 }
  0x5e   : > { %v595_v1 = vsel %vm594_vm2, %v593_v0, 0.0  ;;  %p904_p7 = por %p903_p6, %p902_p4 }
  0x5f   : > { %596 = vadd.xlane.f32.xlu0 %v595_v1 }
  0x60   : > { %p905_p8 = pnand %p904_p7, %p898_p3 }
  0xe8   : > { %v597_v2 = vpop.xlane.xlu0 %596 }
  0xe9   : > { %v598_v3 = vrot.slane %v597_v2, 4 }
  0xeb   : > { %v599_v4 = vadd.f32 %v598_v3, %v597_v2 }
  0xed   : > { %v600_v5 = vrot.slane %v599_v4, 2 }
  0xef   : > { %v601_v6 = vadd.f32 %v600_v5, %v599_v4 }
  0xf1   : > { %v602_v7 = vrot.slane %v601_v6, 1 }
  0xf3   : > { %v603_v8 = vadd.f32 %v602_v7, %v601_v6 }
  0xf5   : > { %837 = vpush %v603_v8 }
 0x126   : > { %s838_s30 = spop %837 }
 0x127   : > { %v605_v9 = vstv %s838_s30 }
 0x128   : > { %606 = vst [vmem:[%s479_s19] sm:$0x1] %v605_v9 }
 0x129   : > { %908 = shalt.err (!%p905_p8)
}
 0x12a   : > { %s909_s22 = scalar_lea.hbm %s632_s13, 16  ;;  %s913_s1 = scalar_lea.hbm %s1190_s7, 32 }
 0x12b   : > { %p910_p11 = scmp.ne.s32.totalorder %s632_s13, %s909_s22  ;;  %p914_p0 = scmp.lt.s32.totalorder %s632_s13, %s1190_s7 }
 0x12c   : > { %p915_p1 = scmp.lt.s32.totalorder %s913_s1, %s909_s22 }
 0x12d   : > { %p911_p12 = pnand %p910_p11, %p1058_p5 }
 0x12e   : > { %p916_p2 = por %p915_p1, %p914_p0 }
 0x12f   : > { %p912_p13 = pneg %p911_p12 }
 0x131   : > { %p917_p10 = pnand %p916_p2, %p912_p13 }
 0x133   : > { %920 = shalt.err (!%p917_p10)
}
 0x134   : > { %839 = dma.vmem_to_hbm [thread:$0]  (%p1058_p5), %s1138_s21, 16, %s632_s13, %s616_s16  }
 0x135 PF: > { %s660_s23 = sand.u32 1, %s951_s24   ;;  %p1201_p3 = scmp.ge.s32.totalorder %s971_s29, 2 }
 0x136   : > { %s661_s30 = scalar_lea.sflag [#allocation5], %s660_s23 }
 0x137   : > { %p842_p4 = pnand %p1201_p3, %p1069_p9 }
 0x139   : > { %p843_p6 = pneg %p842_p4 }
 0x13b   : > { %946 = dma.done.wait (%p843_p6), %s661_s30, 16  }
 0x13c   : > { %948 = vsyncadd (%p843_p6), %s661_s30, 4294967280  ;;  %s21_s29 = sadd.s32 1, %s971_s29   ;;  %s1202_s12 = sld [smem:[#allocation7_spill]] }
 0x13d   : > { %p18_p7 = scmp.ge.s32.totalorder %s21_s29, 4   ;;  %s1203_s24 = smov %s955_s25 }
 0x13e   : > { %s1204_s25 = smov %s959_s26  ;;  %s1205_s26 = smov %s1067_s14 }
 0x13f   : > { %s1206_s27 = smov %s967_s28  ;;  %20 = sbr.rel (!%p18_p7) target bundleno = 7 (0x7), region = 211 }
 0x142   : > { %s1207_s28 = smov %s1202_s12 }
 0x144   :  { %665 = vsyncpa [#allocation5], 1 }
 0x145   :  { %667 = vsyncpa [#allocation5 + $0x1], 1 }

// kernel: unrolled_block_forward.15
= control target key start
LH: loop header
LB: loop body
LE: loop exit
PB: predicated region body
PF: predicated region fallthrough
CT: control target
= control target key end

     0   :  { %13 = vsyncpa [#allocation3], 0  ;;  %s491_s0 = inlined_call_operand.vmem [shape: f32[2,256], index: 0, kind: input, shape index: {}]   ;;  %s492_s1 = inlined_call_operand.vmem [shape: f32[2,256], index: 1, kind: input, shape index: {}]   ;;  %s493_s2 = inlined_call_operand.vmem [shape: f32[2,8], index: 2, kind: input, shape index: {}]   ;;  %s494_s3 = inlined_call_operand.vmem [shape: f32[1,8], index: 3, kind: input, shape index: {}]   ;;  %s495_s4 = inlined_call_operand.vmem [shape: f32[8,2], index: 4, kind: input, shape index: {}]   ;;  %s496_s5 = inlined_call_operand.vmem [shape: f32[1,2], index: 5, kind: input, shape index: {}]   ;;  %s497_s6 = inlined_call_operand.vmem [shape: f32[2,256], index: 6, kind: output, shape index: {0}]   ;;  %s498_s7 = inlined_call_operand.vmem [shape: f32[2,256], index: 7, kind: output, shape index: {1}]  }
   0x1   :  { %14 = vsyncpa [#allocation5], 0  ;;  %s36_s26 = sshll.u32 %s494_s3, 4  ;;  %s37_s26 = int_to_ptr.vmem [resolvable:$true] %s36_s26 }
   0x2   :  { %15 = vsyncpa [#allocation8], 0  ;;  %s26_s29 = sshll.u32 %s493_s2, 4  ;;  %s286_s30 = scalar_lea.vmem %s37_s26, 16  ;;  %s27_s29 = int_to_ptr.vmem [resolvable:$true] %s26_s29 }
   0x3   :  { %p287_p0 = scmp.ne.s32.totalorder %s37_s26, %s286_s30  ;;  %p291_p1 = scmp.lt.s32.totalorder %s37_s26, %s37_s26 }
   0x4   :  { %p292_p2 = scmp.lt.s32.totalorder %s286_s30, %s286_s30 }
   0x6   :  { %p293_p3 = por %p292_p2, %p291_p1 }
   0x8   :  { %p294_p4 = pnand %p293_p3, %p287_p0 }
   0xa   :  { %297 = shalt.err (!%p294_p4)
}
   0xb   :  { %s340_s8 = smov [#allocation4]   ;;  %s298_s9 = scalar_lea.vmem %s27_s29, 32 }
   0xc   :  { %39 = dma.vmem_to_smem %s37_s26, 16, %s340_s8, [#allocation5]  }
   0xd   :  { %p299_p5 = scmp.ne.s32.totalorder %s27_s29, %s298_s9  ;;  %p303_p6 = scmp.lt.s32.totalorder %s27_s29, %s27_s29 }
   0xe   :  { %p304_p7 = scmp.lt.s32.totalorder %s298_s9, %s298_s9 }
  0x10   :  { %p305_p8 = por %p304_p7, %p303_p6 }
  0x12   :  { %p306_p9 = pnand %p305_p8, %p299_p5 }
  0x14   :  { %309 = shalt.err (!%p306_p9)
}
  0x15   :  { %s341_s3 = smov [#allocation2]   ;;  %s46_s11 = sshll.u32 %s495_s4, 4  ;;  %s47_s11 = int_to_ptr.vmem [resolvable:$true] %s46_s11 }
  0x16   :  { %29 = dma.vmem_to_smem %s27_s29, 32, %s341_s3, [#allocation3]  }
  0x17   :  { %s56_s14 = sshll.u32 %s496_s5, 4  ;;  %s310_s15 = scalar_lea.vmem %s47_s11, 128  ;;  %s57_s14 = int_to_ptr.vmem [resolvable:$true] %s56_s14 }
  0x18   :  { %p311_p10 = scmp.ne.s32.totalorder %s47_s11, %s310_s15  ;;  %p315_p11 = scmp.lt.s32.totalorder %s47_s11, %s47_s11 }
  0x19   :  { %p316_p12 = scmp.lt.s32.totalorder %s310_s15, %s310_s15 }
  0x1b   :  { %p317_p13 = por %p316_p12, %p315_p11 }
  0x1d   :  { %p318_p0 = pnand %p317_p13, %p311_p10 }
  0x1f   :  { %321 = shalt.err (!%p318_p0)
}
  0x20   :  { %s342_s16 = smov [#allocation6]   ;;  %s322_s17 = scalar_lea.vmem %s57_s14, 16 }
  0x21   :  { %49 = dma.vmem_to_smem %s47_s11, 128, %s342_s16, [#allocation5]  }
  0x22   :  { %p323_p1 = scmp.ne.s32.totalorder %s57_s14, %s322_s17  ;;  %p327_p2 = scmp.lt.s32.totalorder %s57_s14, %s57_s14 }
  0x23   :  { %p328_p3 = scmp.lt.s32.totalorder %s322_s17, %s322_s17 }
  0x25   :  { %p329_p4 = por %p328_p3, %p327_p2 }
  0x27   :  { %p330_p5 = pnand %p329_p4, %p323_p1 }
  0x29   :  { %333 = shalt.err (!%p330_p5)
}
  0x2a   :  { %s343_s4 = smov [#allocation7]  }
  0x2b   :  { %59 = dma.vmem_to_smem %s57_s14, 16, %s343_s4, [#allocation8]  }
  0x2c   :  { %334 = dma.done.wait [#allocation3], 32  }
  0x2d   :  { %335 = vsyncadd [#allocation3], 4294967264 }
  0x2e   :  { %336 = dma.done.wait [#allocation5], 144  }
  0x2f   :  { %337 = vsyncadd [#allocation5], 4294967152 }
  0x30   :  { %338 = dma.done.wait [#allocation8], 16  }
  0x31   :  { %339 = vsyncadd [#allocation8], 4294967280 }
  0x32   :  { %72 = sfence }
  0x33   :  { %s396_s5 = sld [smem:[#allocation7]]  ;;  %v405_v0 = vld [vmem:[%s491_s0] sm:$0xf] }
  0x34   :  { %s398_s18 = sld [smem:[#allocation7 + $0x1]]  ;;  %v412_v1 = vld [vmem:[%s492_s1] sm:$0xf] }
  0x35   :  { %s79_s19 = sld [smem:[#allocation2]] }
  0x36   :  { %s245_s20 = sld [smem:[#allocation2 + $0x80]] }
  0x37   :  { %s86_s21 = sld [smem:[#allocation4]] }
  0x38   :  { %s400_s22 = sld [smem:[#allocation6]] }
  0x39   :  { %s407_s25 = sld [smem:[#allocation6 + $0x1]]  ;;  %v76_v24 = vstv %s396_s5 }
  0x3a   :  { %s247_s28 = sld [smem:[#allocation2 + $0x1]]  ;;  %v78_v25 = vstv %s398_s18 }
  0x3b   :  { %v80_v2 = vstv %s79_s19  ;;  %s248_s29 = sld [smem:[#allocation2 + $0x81]] }
  0x3c   :  { %v81_v3 = vmul.f32 %v80_v2, %v405_v0  ;;  %v83_v4 = vstv %s245_s20  ;;  %s249_s30 = sld [smem:[#allocation4 + $0x1]] }
  0x3d   :  { %v84_v5 = vmul.f32 %v83_v4, %v412_v1  ;;  %s416_s0 = sld [smem:[#allocation6 + $0x80]]  ;;  %v87_v6 = vstv %s86_s21 }
  0x3e   :  { %s418_s8 = sld [smem:[#allocation6 + $0x81]]  ;;  %v91_v12 = vstv %s400_s22 }
  0x3f   :  { %v85_v7 = vadd.f32 %v84_v5, %v81_v3  ;;  %s252_s9 = sld [smem:[#allocation2 + $0x2]]  ;;  %v95_v15 = vstv %s407_s25 }
  0x40   :  { %v99_v8 = vstv %s247_s28  ;;  %s253_s1 = sld [smem:[#allocation2 + $0x82]] }
  0x41   :  { %v88_v9 = vadd.f32 %v87_v6, %v85_v7  ;;  %v100_v10 = vmul.f32 %v99_v8, %v405_v0  ;;  %v102_v11 = vstv %s248_s29  ;;  %s421_s3 = sld [smem:[#allocation4 + $0x2]] }
  0x42   :  { %v103_v13 = vmul.f32 %v102_v11, %v412_v1  ;;  %s425_s2 = sld [smem:[#allocation6 + $0x100]]  ;;  %v106_v16 = vstv %s249_s30 }
  0x43   :  { %v89_v14 = vmax.f32 %v88_v9, 0.0  ;;  %s428_s10 = sld [smem:[#allocation6 + $0x101]]  ;;  %v110_v26 = vstv %s416_s0 }
  0x44   :  { %v104_v17 = vadd.f32 %v103_v13, %v100_v10  ;;  %s257_s11 = sld [smem:[#allocation2 + $0x3]]  ;;  %v114_v29 = vstv %s418_s8 }
  0x45   :  { %v92_v18 = vmul.f32 %v91_v12, %v89_v14  ;;  %v118_v19 = vstv %s252_s9  ;;  %s258_s12 = sld [smem:[#allocation2 + $0x83]]  ;;  %v96_v20 = vmul.f32 %v95_v15, %v89_v14 }
  0x46   :  { %v107_v21 = vadd.f32 %v106_v16, %v104_v17  ;;  %v119_v22 = vmul.f32 %v118_v19, %v405_v0  ;;  %v121_v23 = vstv %s253_s1  ;;  %s431_s13 = sld [smem:[#allocation4 + $0x3]] }
  0x47   :  { %v122_v27 = vmul.f32 %v121_v23, %v412_v1  ;;  %s437_s14 = sld [smem:[#allocation6 + $0x180]]  ;;  %v125_v30 = vstv %s421_s3  ;;  %v93_v32 = vadd.f32 %v92_v18, %v76_v24  ;;  %v97_v33 = vadd.f32 %v96_v20, %v78_v25 }
  0x48   :  { %v108_v28 = vmax.f32 %v107_v21, 0.0  ;;  %s441_s15 = sld [smem:[#allocation6 + $0x181]]  ;;  %v129_v40 = vstv %s425_s2 }
  0x49   :  { %v123_v31 = vadd.f32 %v122_v27, %v119_v22  ;;  %s262_s16 = sld [smem:[#allocation2 + $0x4]]  ;;  %v133_v43 = vstv %s428_s10 }
  0x4a   :  { %v111_v34 = vmul.f32 %v110_v26, %v108_v28  ;;  %v137_v35 = vstv %s257_s11  ;;  %s263_s17 = sld [smem:[#allocation2 + $0x84]]  ;;  %v115_v36 = vmul.f32 %v114_v29, %v108_v28 }
  0x4b   :  { %v126_v37 = vadd.f32 %v125_v30, %v123_v31  ;;  %v138_v38 = vmul.f32 %v137_v35, %v405_v0  ;;  %v140_v39 = vstv %s258_s12  ;;  %s444_s4 = sld [smem:[#allocation4 + $0x4]] }
  0x4c   :  { %v141_v41 = vmul.f32 %v140_v39, %v412_v1  ;;  %s448_s5 = sld [smem:[#allocation6 + $0x200]]  ;;  %v144_v44 = vstv %s431_s13  ;;  %v112_v46 = vadd.f32 %v111_v34, %v93_v32  ;;  %v116_v47 = vadd.f32 %v115_v36, %v97_v33 }
  0x4d   :  { %v127_v42 = vmax.f32 %v126_v37, 0.0  ;;  %s452_s18 = sld [smem:[#allocation6 + $0x201]]  ;;  %v148_v54 = vstv %s437_s14 }
  0x4e   :  { %v142_v45 = vadd.f32 %v141_v41, %v138_v38  ;;  %s267_s19 = sld [smem:[#allocation2 + $0x5]]  ;;  %v152_v57 = vstv %s441_s15 }
  0x4f   :  { %v130_v48 = vmul.f32 %v129_v40, %v127_v42  ;;  %v156_v49 = vstv %s262_s16  ;;  %s268_s20 = sld [smem:[#allocation2 + $0x85]]  ;;  %v134_v50 = vmul.f32 %v133_v43, %v127_v42 }
  0x50   :  { %v145_v51 = vadd.f32 %v144_v44, %v142_v45  ;;  %v157_v52 = vmul.f32 %v156_v49, %v405_v0  ;;  %v159_v53 = vstv %s263_s17  ;;  %s455_s21 = sld [smem:[#allocation4 + $0x5]] }
  0x51   :  { %v160_v55 = vmul.f32 %v159_v53, %v412_v1  ;;  %s459_s22 = sld [smem:[#allocation6 + $0x280]]  ;;  %v163_v58 = vstv %s444_s4  ;;  %v131_v60 = vadd.f32 %v130_v48, %v112_v46  ;;  %v135_v61 = vadd.f32 %v134_v50, %v116_v47 }
  0x52   :  { %v146_v56 = vmax.f32 %v145_v51, 0.0  ;;  %s463_s23 = sld [smem:[#allocation6 + $0x281]]  ;;  %v167_v6 = vstv %s448_s5 }
  0x53   :  { %v161_v59 = vadd.f32 %v160_v55, %v157_v52  ;;  %s272_s24 = sld [smem:[#allocation2 + $0x6]]  ;;  %v171_v9 = vstv %s452_s18 }
  0x54   :  { %v149_v62 = vmul.f32 %v148_v54, %v146_v56  ;;  %v175_v63 = vstv %s267_s19  ;;  %s273_s25 = sld [smem:[#allocation2 + $0x86]]  ;;  %v153_v2 = vmul.f32 %v152_v57, %v146_v56 }
  0x55   :  { %v164_v3 = vadd.f32 %v163_v58, %v161_v59  ;;  %v176_v4 = vmul.f32 %v175_v63, %v405_v0  ;;  %v178_v5 = vstv %s268_s20  ;;  %s466_s26 = sld [smem:[#allocation4 + $0x6]] }
  0x56   :  { %v179_v7 = vmul.f32 %v178_v5, %v412_v1  ;;  %s470_s27 = sld [smem:[#allocation6 + $0x300]]  ;;  %v182_v10 = vstv %s455_s21  ;;  %v150_v12 = vadd.f32 %v149_v62, %v131_v60  ;;  %v154_v13 = vadd.f32 %v153_v2, %v135_v61 }
  0x57   :  { %v165_v8 = vmax.f32 %v164_v3, 0.0  ;;  %s474_s28 = sld [smem:[#allocation6 + $0x301]]  ;;  %v186_v20 = vstv %s459_s22 }
  0x58   :  { %v180_v11 = vadd.f32 %v179_v7, %v176_v4  ;;  %s277_s29 = sld [smem:[#allocation2 + $0x7]]  ;;  %v190_v21 = vstv %s463_s23 }
  0x59   :  { %v168_v14 = vmul.f32 %v167_v6, %v165_v8  ;;  %v194_v15 = vstv %s272_s24  ;;  %s278_s30 = sld [smem:[#allocation2 + $0x87]]  ;;  %v172_v16 = vmul.f32 %v171_v9, %v165_v8 }
  0x5a   :  { %v183_v17 = vadd.f32 %v182_v10, %v180_v11  ;;  %v195_v18 = vmul.f32 %v194_v15, %v405_v0  ;;  %v197_v19 = vstv %s273_s25  ;;  %s279_s0 = sld [smem:[#allocation4 + $0x7]] }
  0x5b   :  { %v198_v22 = vmul.f32 %v197_v19, %v412_v1  ;;  %v201_v24 = vstv %s466_s26  ;;  %s280_s8 = sld [smem:[#allocation6 + $0x380]]  ;;  %v169_v25 = vadd.f32 %v168_v14, %v150_v12  ;;  %v173_v27 = vadd.f32 %v172_v16, %v154_v13 }
  0x5c   :  { %v184_v23 = vmax.f32 %v183_v17, 0.0  ;;  %s281_s9 = sld [smem:[#allocation6 + $0x381]]  ;;  %v205_v34 = vstv %s470_s27 }
  0x5d   :  { %v199_v26 = vadd.f32 %v198_v22, %v195_v18  ;;  %v209_v35 = vstv %s474_s28 }
  0x5e   :  { %v187_v28 = vmul.f32 %v186_v20, %v184_v23  ;;  %v191_v29 = vmul.f32 %v190_v21, %v184_v23  ;;  %v213_v30 = vstv %s277_s29 }
  0x5f   :  { %v202_v31 = vadd.f32 %v201_v24, %v199_v26  ;;  %v214_v32 = vmul.f32 %v213_v30, %v405_v0  ;;  %v216_v33 = vstv %s278_s30 }
  0x60   :  { %v217_v36 = vmul.f32 %v216_v33, %v412_v1  ;;  %v220_v38 = vstv %s279_s0  ;;  %v188_v39 = vadd.f32 %v187_v28, %v169_v25  ;;  %v192_v40 = vadd.f32 %v191_v29, %v173_v27 }
  0x61   :  { %v203_v37 = vmax.f32 %v202_v31, 0.0  ;;  %v224_v45 = vstv %s280_s8 }
  0x62   :  { %v218_v41 = vadd.f32 %v217_v36, %v214_v32  ;;  %v228_v46 = vstv %s281_s9 }
  0x63   :  { %v206_v42 = vmul.f32 %v205_v34, %v203_v37  ;;  %v210_v43 = vmul.f32 %v209_v35, %v203_v37 }
  0x64   :  { %v221_v44 = vadd.f32 %v220_v38, %v218_v41 }
  0x65   :  { %v207_v47 = vadd.f32 %v206_v42, %v188_v39  ;;  %v211_v48 = vadd.f32 %v210_v43, %v192_v40 }
  0x66   :  { %v222_v49 = vmax.f32 %v221_v44, 0.0 }
  0x68   :  { %v225_v50 = vmul.f32 %v224_v45, %v222_v49  ;;  %v229_v0 = vmul.f32 %v228_v46, %v222_v49 }
  0x6a   :  { %v226_v51 = vadd.f32 %v225_v50, %v207_v47  ;;  %v230_v52 = vadd.f32 %v229_v0, %v211_v48 }
  0x6c   :  { %231 = vst [vmem:[%s497_s6] sm:$0xf] %v226_v51  ;;  %232 = vst [vmem:[%s498_s7] sm:$0xf] %v230_v52 }
  0x6d   :  { %241 = vsyncpa [#allocation3], 1 }
  0x6e   :  { %242 = vsyncpa [#allocation5], 1 }
  0x6f   :  { %243 = vsyncpa [#allocation8], 1 }

</bundles_post_ra>
